<compile_context>
chip_gen: v6e
topology: v6e:2x2x1
jax: 0.10.0
libtpu: 0.0.40
codegen_flags: <defaults>
</compile_context>

<pallas_src>
import jax
import jax.numpy as jnp
from jax import lax
from jax.experimental import pallas as pl
from jax.experimental.pallas import tpu as pltpu


def _lstm_tagger_kernel(
    embeds_ref,        # (S, E)    f32
    wih_all_ref,       # (E, 8H)   f32   [fwd W_ih^T | bwd W_ih^T]
    b_all_ref,         # (1, 8H)   f32   [fwd b_ih+b_hh | bwd b_ih+b_hh]
    whh_f_ref,         # (H, 4H)   f32   forward  W_hh^T
    whh_b_ref,         # (H, 4H)   f32   backward W_hh^T
    wout_ref,          # (2H, T)   f32   hidden2tag weight^T = [wout_f; wout_b]
    bout_ref,          # (1, T)    f32   hidden2tag bias
    out_ref,           # (S, T)    f32   log-softmax scores
):
    S, E = embeds_ref.shape
    H = whh_f_ref.shape[0]
    H4 = 4 * H

    # ---- hoisted input projection (both directions, one MXU matmul) ----
    gin = (
        jnp.dot(embeds_ref[...], wih_all_ref[...], preferred_element_type=jnp.float32)
        + b_all_ref[...]
    )                                                        # (S, 8H)
    gin_f = gin[:, :H4]                                      # (S, 4H)
    gin_b = gin[:, H4:]                                      # (S, 4H)

    whh_f = whh_f_ref[...]
    whh_b = whh_b_ref[...]

    def half_cell(pre, h, c, whh):
        # gates in PyTorch order: i, f, g, o
        g = pre + jnp.dot(h, whh, preferred_element_type=jnp.float32)   # (1, 4H)
        sig = jax.nn.sigmoid(g)      # one EUP push on the full 4H vreg
        th = jnp.tanh(g)             # one EUP push on the full 4H vreg
        i_g = sig[:, 0 * H:1 * H]
        f_g = sig[:, 1 * H:2 * H]
        o_g = sig[:, 3 * H:4 * H]
        g_g = th[:, 2 * H:3 * H]
        c_new = f_g * c + i_g * g_g
        h_new = o_g * jnp.tanh(c_new)
        return h_new, c_new

    zero = jnp.zeros((1, H), jnp.float32)
    h_f, c_f = zero, zero
    h_b, c_b = zero, zero
    h_fwd = [None] * S
    h_bwd = [None] * S

    # ---- fused, fully-unrolled bidirectional recurrence ----
    # Forward processes t = 0..S-1 while backward processes S-1-t; the two
    # chains are data-independent, so their matmuls / EUP / VPU work overlap.
    for t in range(S):
        tb = S - 1 - t
        h_f, c_f = half_cell(gin_f[t:t + 1, :], h_f, c_f, whh_f)
        h_b, c_b = half_cell(gin_b[tb:tb + 1, :], h_b, c_b, whh_b)
        h_fwd[t] = h_f
        h_bwd[tb] = h_b

    hs = jnp.concatenate(
        [jnp.concatenate(h_fwd, axis=0), jnp.concatenate(h_bwd, axis=0)],
        axis=1,
    )                                                        # (S, 2H)

    # ---- merged hidden2tag linear + log_softmax(dim=1) ----
    logits = (
        jnp.dot(hs, wout_ref[...], preferred_element_type=jnp.float32)
        + bout_ref[...]
    )                                                        # (S, T)
    m = jnp.max(logits, axis=1, keepdims=True)
    z = logits - m
    lse = jnp.log(jnp.sum(jnp.exp(z), axis=1, keepdims=True))
    out_ref[...] = z - lse


def lstm_tagger_forward(sentence, params):
    """sentence: int32 (S,) token ids; params: dict of f32 arrays."""
    emb_table = params["embedding"]                          # (V, E)
    embeds = jnp.take(emb_table, sentence, axis=0)           # (S, E)  glue gather
    S, E = embeds.shape
    H = params["whh_f"].shape[0]
    T = params["bout"].shape[-1]

    # Pre-concatenate weights so the kernel does one input-projection matmul
    # and one output matmul (trace-time ops, effectively free).
    wih_all = jnp.concatenate([params["wih_f"], params["wih_b"]], axis=1)   # (E, 8H)
    b_all = jnp.concatenate([params["b_f"], params["b_b"]], axis=1)         # (1, 8H)
    wout = jnp.concatenate([params["wout_f"], params["wout_b"]], axis=0)    # (2H, T)

    vmem = pl.BlockSpec(memory_space=pltpu.MemorySpace.VMEM)
    kernel = pl.pallas_call(
        _lstm_tagger_kernel,
        out_shape=jax.ShapeDtypeStruct((S, T), jnp.float32),
        in_specs=[vmem] * 7,
        out_specs=vmem,
    )
    return kernel(
        embeds, wih_all, b_all,
        params["whh_f"], params["whh_b"],
        wout, params["bout"],
    )


def make_params(key, vocab_size, embedding_dim, hidden_dim, tagset_size):
    """Deterministic parameter init (uniform +-1/sqrt(H), PyTorch-style)."""
    ks = jax.random.split(key, 12)
    H, E, T, V = hidden_dim, embedding_dim, tagset_size, vocab_size
    s = 1.0 / jnp.sqrt(H)

    def u(k, shape):
        return jax.random.uniform(k, shape, jnp.float32, -s, s)

    params = {
        "embedding": jax.random.normal(ks[0], (V, E), jnp.float32),
        # forward direction (stored transposed: x @ W^T  ->  x @ W_T)
        "wih_f": u(ks[1], (E, 4 * H)),
        "whh_f": u(ks[2], (H, 4 * H)),
        "b_f":   u(ks[3], (1, 4 * H)) + u(ks[4], (1, 4 * H)),   # b_ih + b_hh
        # backward direction
        "wih_b": u(ks[5], (E, 4 * H)),
        "whh_b": u(ks[6], (H, 4 * H)),
        "b_b":   u(ks[7], (1, 4 * H)) + u(ks[8], (1, 4 * H)),
        # hidden2tag: Linear(2H, T); split the 2H axis into fwd/bwd halves
        "wout_f": u(ks[9],  (H, T)),
        "wout_b": u(ks[10], (H, T)),
        "bout":   u(ks[11], (1, T)),
    }
    return params


def reference_forward(sentence, params):
    """Pure-JAX reference for the same forward pass (numerical check)."""
    embeds = jnp.take(params["embedding"], sentence, axis=0)
    H = params["whh_f"].shape[0]

    def run_dir(xs, wih, whh, b):
        def step(carry, x_t):
            h, c = carry
            g = x_t[None, :] @ wih + h @ whh + b
            i = jax.nn.sigmoid(g[:, 0 * H:1 * H])
            f = jax.nn.sigmoid(g[:, 1 * H:2 * H])
            gg = jnp.tanh(g[:, 2 * H:3 * H])
            o = jax.nn.sigmoid(g[:, 3 * H:4 * H])
            c_new = f * c + i * gg
            h_new = o * jnp.tanh(c_new)
            return (h_new, c_new), h_new[0]
        h0 = jnp.zeros((1, H), jnp.float32)
        _, hs = lax.scan(step, (h0, h0), xs)
        return hs

    fwd = run_dir(embeds, params["wih_f"], params["whh_f"], params["b_f"])
    bwd = run_dir(embeds[::-1], params["wih_b"], params["whh_b"], params["b_b"])[::-1]
    logits = fwd @ params["wout_f"] + bwd @ params["wout_b"] + params["bout"]
    return jax.nn.log_softmax(logits, axis=1)


if __name__ == "__main__":
    VOCAB, EMB, HID, TAGS, SEQ = 50, 32, 32, 8, 8

    key = jax.random.PRNGKey(0)
    k_params, k_sent = jax.random.split(key)
    params = make_params(k_params, VOCAB, EMB, HID, TAGS)
    sentence = jax.random.randint(k_sent, (SEQ,), 0, VOCAB, dtype=jnp.int32)

    scores = lstm_tagger_forward(sentence, params)
    scores = jax.block_until_ready(scores)

    ref = jax.block_until_ready(reference_forward(sentence, params))
    assert scores.shape == (SEQ, TAGS)
    assert jnp.allclose(scores, ref, atol=1e-4, rtol=1e-4), "mismatch vs reference"

    print("KERNEL_OK")
</pallas_src>

<mosaic_0001>
module attributes {stable_mosaic.version = 11 : i64} {
  func.func @_lstm_tagger_kernel(%arg0: memref<8x32xf32, #tpu.memory_space<vmem>>, %arg1: memref<32x256xf32, #tpu.memory_space<vmem>>, %arg2: memref<1x256xf32, #tpu.memory_space<vmem>>, %arg3: memref<32x128xf32, #tpu.memory_space<vmem>>, %arg4: memref<32x128xf32, #tpu.memory_space<vmem>>, %arg5: memref<64x8xf32, #tpu.memory_space<vmem>>, %arg6: memref<1x8xf32, #tpu.memory_space<vmem>>, %arg7: memref<8x8xf32, #tpu.memory_space<vmem>>) attributes {dimension_semantics = [], scalar_prefetch = 0 : i64, scratch_operands = 0 : i64, tpu.core_type = #tpu.core_type<tc>} {
    %c0 = arith.constant 0 : index
    %c0_0 = arith.constant 0 : index
    %0 = vector.load %arg0[%c0, %c0_0] : memref<8x32xf32, #tpu.memory_space<vmem>>, vector<8x32xf32>
    %c0_1 = arith.constant 0 : index
    %c0_2 = arith.constant 0 : index
    %1 = vector.load %arg1[%c0_1, %c0_2] : memref<32x256xf32, #tpu.memory_space<vmem>>, vector<32x256xf32>
    %cst = arith.constant dense<0.000000e+00> : vector<8x256xf32>
    %2 = tpu.matmul %0, %1, %cst {dimension_numbers = #tpu.dot_dimension_numbers<[1], [0], [0], [1], [0, 0, 1, 1], [], []>} : vector<8x32xf32>, vector<32x256xf32>, vector<8x256xf32> -> vector<8x256xf32>
    %c0_3 = arith.constant 0 : index
    %c0_4 = arith.constant 0 : index
    %3 = vector.load %arg2[%c0_3, %c0_4] : memref<1x256xf32, #tpu.memory_space<vmem>>, vector<1x256xf32>
    %4 = vector.broadcast %3 : vector<1x256xf32> to vector<8x256xf32>
    %5 = arith.addf %2, %4 : vector<8x256xf32>
    %6 = vector.extract_strided_slice %5 {offsets = [0, 0], sizes = [8, 128], strides = [1, 1]} : vector<8x256xf32> to vector<8x128xf32>
    %7 = vector.extract_strided_slice %5 {offsets = [0, 128], sizes = [8, 128], strides = [1, 1]} : vector<8x256xf32> to vector<8x128xf32>
    %c0_5 = arith.constant 0 : index
    %c0_6 = arith.constant 0 : index
    %8 = vector.load %arg3[%c0_5, %c0_6] : memref<32x128xf32, #tpu.memory_space<vmem>>, vector<32x128xf32>
    %c0_7 = arith.constant 0 : index
    %c0_8 = arith.constant 0 : index
    %9 = vector.load %arg4[%c0_7, %c0_8] : memref<32x128xf32, #tpu.memory_space<vmem>>, vector<32x128xf32>
    %cst_9 = arith.constant 0.000000e+00 : f32
    %10 = vector.broadcast %cst_9 : f32 to vector<1x32xf32>
    %11 = vector.extract_strided_slice %6 {offsets = [0, 0], sizes = [1, 128], strides = [1, 1]} : vector<8x128xf32> to vector<1x128xf32>
    %cst_10 = arith.constant dense<0.000000e+00> : vector<1x128xf32>
    %12 = tpu.matmul %10, %8, %cst_10 {dimension_numbers = #tpu.dot_dimension_numbers<[1], [0], [0], [1], [0, 0, 1, 1], [], []>} : vector<1x32xf32>, vector<32x128xf32>, vector<1x128xf32> -> vector<1x128xf32>
    %13 = arith.addf %11, %12 : vector<1x128xf32>
    %14 = arith.negf %13 : vector<1x128xf32>
    %15 = math.exp %14 : vector<1x128xf32>
    %cst_11 = arith.constant 1.000000e+00 : f32
    %16 = vector.broadcast %cst_11 : f32 to vector<1x128xf32>
    %17 = arith.addf %16, %15 : vector<1x128xf32>
    %18 = arith.divf %16, %17 : vector<1x128xf32>
    %19 = math.tanh %13 : vector<1x128xf32>
    %20 = vector.extract_strided_slice %18 {offsets = [0, 0], sizes = [1, 32], strides = [1, 1]} : vector<1x128xf32> to vector<1x32xf32>
    %21 = vector.extract_strided_slice %18 {offsets = [0, 32], sizes = [1, 32], strides = [1, 1]} : vector<1x128xf32> to vector<1x32xf32>
    %22 = vector.extract_strided_slice %18 {offsets = [0, 96], sizes = [1, 32], strides = [1, 1]} : vector<1x128xf32> to vector<1x32xf32>
    %23 = vector.extract_strided_slice %19 {offsets = [0, 64], sizes = [1, 32], strides = [1, 1]} : vector<1x128xf32> to vector<1x32xf32>
    %24 = arith.mulf %21, %10 : vector<1x32xf32>
    %25 = arith.mulf %20, %23 : vector<1x32xf32>
    %26 = arith.addf %24, %25 : vector<1x32xf32>
    %27 = math.tanh %26 : vector<1x32xf32>
    %28 = arith.mulf %22, %27 : vector<1x32xf32>
    %29 = vector.extract_strided_slice %7 {offsets = [7, 0], sizes = [1, 128], strides = [1, 1]} : vector<8x128xf32> to vector<1x128xf32>
    %cst_12 = arith.constant dense<0.000000e+00> : vector<1x128xf32>
    %30 = tpu.matmul %10, %9, %cst_12 {dimension_numbers = #tpu.dot_dimension_numbers<[1], [0], [0], [1], [0, 0, 1, 1], [], []>} : vector<1x32xf32>, vector<32x128xf32>, vector<1x128xf32> -> vector<1x128xf32>
    %31 = arith.addf %29, %30 : vector<1x128xf32>
    %32 = arith.negf %31 : vector<1x128xf32>
    %33 = math.exp %32 : vector<1x128xf32>
    %cst_13 = arith.constant 1.000000e+00 : f32
    %34 = vector.broadcast %cst_13 : f32 to vector<1x128xf32>
    %35 = arith.addf %34, %33 : vector<1x128xf32>
    %36 = arith.divf %34, %35 : vector<1x128xf32>
    %37 = math.tanh %31 : vector<1x128xf32>
    %38 = vector.extract_strided_slice %36 {offsets = [0, 0], sizes = [1, 32], strides = [1, 1]} : vector<1x128xf32> to vector<1x32xf32>
    %39 = vector.extract_strided_slice %36 {offsets = [0, 32], sizes = [1, 32], strides = [1, 1]} : vector<1x128xf32> to vector<1x32xf32>
    %40 = vector.extract_strided_slice %36 {offsets = [0, 96], sizes = [1, 32], strides = [1, 1]} : vector<1x128xf32> to vector<1x32xf32>
    %41 = vector.extract_strided_slice %37 {offsets = [0, 64], sizes = [1, 32], strides = [1, 1]} : vector<1x128xf32> to vector<1x32xf32>
    %42 = arith.mulf %39, %10 : vector<1x32xf32>
    %43 = arith.mulf %38, %41 : vector<1x32xf32>
    %44 = arith.addf %42, %43 : vector<1x32xf32>
    %45 = math.tanh %44 : vector<1x32xf32>
    %46 = arith.mulf %40, %45 : vector<1x32xf32>
    %47 = vector.extract_strided_slice %6 {offsets = [1, 0], sizes = [1, 128], strides = [1, 1]} : vector<8x128xf32> to vector<1x128xf32>
    %cst_14 = arith.constant dense<0.000000e+00> : vector<1x128xf32>
    %48 = tpu.matmul %28, %8, %cst_14 {dimension_numbers = #tpu.dot_dimension_numbers<[1], [0], [0], [1], [0, 0, 1, 1], [], []>} : vector<1x32xf32>, vector<32x128xf32>, vector<1x128xf32> -> vector<1x128xf32>
    %49 = arith.addf %47, %48 : vector<1x128xf32>
    %50 = arith.negf %49 : vector<1x128xf32>
    %51 = math.exp %50 : vector<1x128xf32>
    %cst_15 = arith.constant 1.000000e+00 : f32
    %52 = vector.broadcast %cst_15 : f32 to vector<1x128xf32>
    %53 = arith.addf %52, %51 : vector<1x128xf32>
    %54 = arith.divf %52, %53 : vector<1x128xf32>
    %55 = math.tanh %49 : vector<1x128xf32>
    %56 = vector.extract_strided_slice %54 {offsets = [0, 0], sizes = [1, 32], strides = [1, 1]} : vector<1x128xf32> to vector<1x32xf32>
    %57 = vector.extract_strided_slice %54 {offsets = [0, 32], sizes = [1, 32], strides = [1, 1]} : vector<1x128xf32> to vector<1x32xf32>
    %58 = vector.extract_strided_slice %54 {offsets = [0, 96], sizes = [1, 32], strides = [1, 1]} : vector<1x128xf32> to vector<1x32xf32>
    %59 = vector.extract_strided_slice %55 {offsets = [0, 64], sizes = [1, 32], strides = [1, 1]} : vector<1x128xf32> to vector<1x32xf32>
    %60 = arith.mulf %57, %26 : vector<1x32xf32>
    %61 = arith.mulf %56, %59 : vector<1x32xf32>
    %62 = arith.addf %60, %61 : vector<1x32xf32>
    %63 = math.tanh %62 : vector<1x32xf32>
    %64 = arith.mulf %58, %63 : vector<1x32xf32>
    %65 = vector.extract_strided_slice %7 {offsets = [6, 0], sizes = [1, 128], strides = [1, 1]} : vector<8x128xf32> to vector<1x128xf32>
    %cst_16 = arith.constant dense<0.000000e+00> : vector<1x128xf32>
    %66 = tpu.matmul %46, %9, %cst_16 {dimension_numbers = #tpu.dot_dimension_numbers<[1], [0], [0], [1], [0, 0, 1, 1], [], []>} : vector<1x32xf32>, vector<32x128xf32>, vector<1x128xf32> -> vector<1x128xf32>
    %67 = arith.addf %65, %66 : vector<1x128xf32>
    %68 = arith.negf %67 : vector<1x128xf32>
    %69 = math.exp %68 : vector<1x128xf32>
    %cst_17 = arith.constant 1.000000e+00 : f32
    %70 = vector.broadcast %cst_17 : f32 to vector<1x128xf32>
    %71 = arith.addf %70, %69 : vector<1x128xf32>
    %72 = arith.divf %70, %71 : vector<1x128xf32>
    %73 = math.tanh %67 : vector<1x128xf32>
    %74 = vector.extract_strided_slice %72 {offsets = [0, 0], sizes = [1, 32], strides = [1, 1]} : vector<1x128xf32> to vector<1x32xf32>
    %75 = vector.extract_strided_slice %72 {offsets = [0, 32], sizes = [1, 32], strides = [1, 1]} : vector<1x128xf32> to vector<1x32xf32>
    %76 = vector.extract_strided_slice %72 {offsets = [0, 96], sizes = [1, 32], strides = [1, 1]} : vector<1x128xf32> to vector<1x32xf32>
    %77 = vector.extract_strided_slice %73 {offsets = [0, 64], sizes = [1, 32], strides = [1, 1]} : vector<1x128xf32> to vector<1x32xf32>
    %78 = arith.mulf %75, %44 : vector<1x32xf32>
    %79 = arith.mulf %74, %77 : vector<1x32xf32>
    %80 = arith.addf %78, %79 : vector<1x32xf32>
    %81 = math.tanh %80 : vector<1x32xf32>
    %82 = arith.mulf %76, %81 : vector<1x32xf32>
    %83 = vector.extract_strided_slice %6 {offsets = [2, 0], sizes = [1, 128], strides = [1, 1]} : vector<8x128xf32> to vector<1x128xf32>
    %cst_18 = arith.constant dense<0.000000e+00> : vector<1x128xf32>
    %84 = tpu.matmul %64, %8, %cst_18 {dimension_numbers = #tpu.dot_dimension_numbers<[1], [0], [0], [1], [0, 0, 1, 1], [], []>} : vector<1x32xf32>, vector<32x128xf32>, vector<1x128xf32> -> vector<1x128xf32>
    %85 = arith.addf %83, %84 : vector<1x128xf32>
    %86 = arith.negf %85 : vector<1x128xf32>
    %87 = math.exp %86 : vector<1x128xf32>
    %cst_19 = arith.constant 1.000000e+00 : f32
    %88 = vector.broadcast %cst_19 : f32 to vector<1x128xf32>
    %89 = arith.addf %88, %87 : vector<1x128xf32>
    %90 = arith.divf %88, %89 : vector<1x128xf32>
    %91 = math.tanh %85 : vector<1x128xf32>
    %92 = vector.extract_strided_slice %90 {offsets = [0, 0], sizes = [1, 32], strides = [1, 1]} : vector<1x128xf32> to vector<1x32xf32>
    %93 = vector.extract_strided_slice %90 {offsets = [0, 32], sizes = [1, 32], strides = [1, 1]} : vector<1x128xf32> to vector<1x32xf32>
    %94 = vector.extract_strided_slice %90 {offsets = [0, 96], sizes = [1, 32], strides = [1, 1]} : vector<1x128xf32> to vector<1x32xf32>
    %95 = vector.extract_strided_slice %91 {offsets = [0, 64], sizes = [1, 32], strides = [1, 1]} : vector<1x128xf32> to vector<1x32xf32>
    %96 = arith.mulf %93, %62 : vector<1x32xf32>
    %97 = arith.mulf %92, %95 : vector<1x32xf32>
    %98 = arith.addf %96, %97 : vector<1x32xf32>
    %99 = math.tanh %98 : vector<1x32xf32>
    %100 = arith.mulf %94, %99 : vector<1x32xf32>
    %101 = vector.extract_strided_slice %7 {offsets = [5, 0], sizes = [1, 128], strides = [1, 1]} : vector<8x128xf32> to vector<1x128xf32>
    %cst_20 = arith.constant dense<0.000000e+00> : vector<1x128xf32>
    %102 = tpu.matmul %82, %9, %cst_20 {dimension_numbers = #tpu.dot_dimension_numbers<[1], [0], [0], [1], [0, 0, 1, 1], [], []>} : vector<1x32xf32>, vector<32x128xf32>, vector<1x128xf32> -> vector<1x128xf32>
    %103 = arith.addf %101, %102 : vector<1x128xf32>
    %104 = arith.negf %103 : vector<1x128xf32>
    %105 = math.exp %104 : vector<1x128xf32>
    %cst_21 = arith.constant 1.000000e+00 : f32
    %106 = vector.broadcast %cst_21 : f32 to vector<1x128xf32>
    %107 = arith.addf %106, %105 : vector<1x128xf32>
    %108 = arith.divf %106, %107 : vector<1x128xf32>
    %109 = math.tanh %103 : vector<1x128xf32>
    %110 = vector.extract_strided_slice %108 {offsets = [0, 0], sizes = [1, 32], strides = [1, 1]} : vector<1x128xf32> to vector<1x32xf32>
    %111 = vector.extract_strided_slice %108 {offsets = [0, 32], sizes = [1, 32], strides = [1, 1]} : vector<1x128xf32> to vector<1x32xf32>
    %112 = vector.extract_strided_slice %108 {offsets = [0, 96], sizes = [1, 32], strides = [1, 1]} : vector<1x128xf32> to vector<1x32xf32>
    %113 = vector.extract_strided_slice %109 {offsets = [0, 64], sizes = [1, 32], strides = [1, 1]} : vector<1x128xf32> to vector<1x32xf32>
    %114 = arith.mulf %111, %80 : vector<1x32xf32>
    %115 = arith.mulf %110, %113 : vector<1x32xf32>
    %116 = arith.addf %114, %115 : vector<1x32xf32>
    %117 = math.tanh %116 : vector<1x32xf32>
    %118 = arith.mulf %112, %117 : vector<1x32xf32>
    %119 = vector.extract_strided_slice %6 {offsets = [3, 0], sizes = [1, 128], strides = [1, 1]} : vector<8x128xf32> to vector<1x128xf32>
    %cst_22 = arith.constant dense<0.000000e+00> : vector<1x128xf32>
    %120 = tpu.matmul %100, %8, %cst_22 {dimension_numbers = #tpu.dot_dimension_numbers<[1], [0], [0], [1], [0, 0, 1, 1], [], []>} : vector<1x32xf32>, vector<32x128xf32>, vector<1x128xf32> -> vector<1x128xf32>
    %121 = arith.addf %119, %120 : vector<1x128xf32>
    %122 = arith.negf %121 : vector<1x128xf32>
    %123 = math.exp %122 : vector<1x128xf32>
    %cst_23 = arith.constant 1.000000e+00 : f32
    %124 = vector.broadcast %cst_23 : f32 to vector<1x128xf32>
    %125 = arith.addf %124, %123 : vector<1x128xf32>
    %126 = arith.divf %124, %125 : vector<1x128xf32>
    %127 = math.tanh %121 : vector<1x128xf32>
    %128 = vector.extract_strided_slice %126 {offsets = [0, 0], sizes = [1, 32], strides = [1, 1]} : vector<1x128xf32> to vector<1x32xf32>
    %129 = vector.extract_strided_slice %126 {offsets = [0, 32], sizes = [1, 32], strides = [1, 1]} : vector<1x128xf32> to vector<1x32xf32>
    %130 = vector.extract_strided_slice %126 {offsets = [0, 96], sizes = [1, 32], strides = [1, 1]} : vector<1x128xf32> to vector<1x32xf32>
    %131 = vector.extract_strided_slice %127 {offsets = [0, 64], sizes = [1, 32], strides = [1, 1]} : vector<1x128xf32> to vector<1x32xf32>
    %132 = arith.mulf %129, %98 : vector<1x32xf32>
    %133 = arith.mulf %128, %131 : vector<1x32xf32>
    %134 = arith.addf %132, %133 : vector<1x32xf32>
    %135 = math.tanh %134 : vector<1x32xf32>
    %136 = arith.mulf %130, %135 : vector<1x32xf32>
    %137 = vector.extract_strided_slice %7 {offsets = [4, 0], sizes = [1, 128], strides = [1, 1]} : vector<8x128xf32> to vector<1x128xf32>
    %cst_24 = arith.constant dense<0.000000e+00> : vector<1x128xf32>
    %138 = tpu.matmul %118, %9, %cst_24 {dimension_numbers = #tpu.dot_dimension_numbers<[1], [0], [0], [1], [0, 0, 1, 1], [], []>} : vector<1x32xf32>, vector<32x128xf32>, vector<1x128xf32> -> vector<1x128xf32>
    %139 = arith.addf %137, %138 : vector<1x128xf32>
    %140 = arith.negf %139 : vector<1x128xf32>
    %141 = math.exp %140 : vector<1x128xf32>
    %cst_25 = arith.constant 1.000000e+00 : f32
    %142 = vector.broadcast %cst_25 : f32 to vector<1x128xf32>
    %143 = arith.addf %142, %141 : vector<1x128xf32>
    %144 = arith.divf %142, %143 : vector<1x128xf32>
    %145 = math.tanh %139 : vector<1x128xf32>
    %146 = vector.extract_strided_slice %144 {offsets = [0, 0], sizes = [1, 32], strides = [1, 1]} : vector<1x128xf32> to vector<1x32xf32>
    %147 = vector.extract_strided_slice %144 {offsets = [0, 32], sizes = [1, 32], strides = [1, 1]} : vector<1x128xf32> to vector<1x32xf32>
    %148 = vector.extract_strided_slice %144 {offsets = [0, 96], sizes = [1, 32], strides = [1, 1]} : vector<1x128xf32> to vector<1x32xf32>
    %149 = vector.extract_strided_slice %145 {offsets = [0, 64], sizes = [1, 32], strides = [1, 1]} : vector<1x128xf32> to vector<1x32xf32>
    %150 = arith.mulf %147, %116 : vector<1x32xf32>
    %151 = arith.mulf %146, %149 : vector<1x32xf32>
    %152 = arith.addf %150, %151 : vector<1x32xf32>
    %153 = math.tanh %152 : vector<1x32xf32>
    %154 = arith.mulf %148, %153 : vector<1x32xf32>
    %155 = vector.extract_strided_slice %6 {offsets = [4, 0], sizes = [1, 128], strides = [1, 1]} : vector<8x128xf32> to vector<1x128xf32>
    %cst_26 = arith.constant dense<0.000000e+00> : vector<1x128xf32>
    %156 = tpu.matmul %136, %8, %cst_26 {dimension_numbers = #tpu.dot_dimension_numbers<[1], [0], [0], [1], [0, 0, 1, 1], [], []>} : vector<1x32xf32>, vector<32x128xf32>, vector<1x128xf32> -> vector<1x128xf32>
    %157 = arith.addf %155, %156 : vector<1x128xf32>
    %158 = arith.negf %157 : vector<1x128xf32>
    %159 = math.exp %158 : vector<1x128xf32>
    %cst_27 = arith.constant 1.000000e+00 : f32
    %160 = vector.broadcast %cst_27 : f32 to vector<1x128xf32>
    %161 = arith.addf %160, %159 : vector<1x128xf32>
    %162 = arith.divf %160, %161 : vector<1x128xf32>
    %163 = math.tanh %157 : vector<1x128xf32>
    %164 = vector.extract_strided_slice %162 {offsets = [0, 0], sizes = [1, 32], strides = [1, 1]} : vector<1x128xf32> to vector<1x32xf32>
    %165 = vector.extract_strided_slice %162 {offsets = [0, 32], sizes = [1, 32], strides = [1, 1]} : vector<1x128xf32> to vector<1x32xf32>
    %166 = vector.extract_strided_slice %162 {offsets = [0, 96], sizes = [1, 32], strides = [1, 1]} : vector<1x128xf32> to vector<1x32xf32>
    %167 = vector.extract_strided_slice %163 {offsets = [0, 64], sizes = [1, 32], strides = [1, 1]} : vector<1x128xf32> to vector<1x32xf32>
    %168 = arith.mulf %165, %134 : vector<1x32xf32>
    %169 = arith.mulf %164, %167 : vector<1x32xf32>
    %170 = arith.addf %168, %169 : vector<1x32xf32>
    %171 = math.tanh %170 : vector<1x32xf32>
    %172 = arith.mulf %166, %171 : vector<1x32xf32>
    %173 = vector.extract_strided_slice %7 {offsets = [3, 0], sizes = [1, 128], strides = [1, 1]} : vector<8x128xf32> to vector<1x128xf32>
    %cst_28 = arith.constant dense<0.000000e+00> : vector<1x128xf32>
    %174 = tpu.matmul %154, %9, %cst_28 {dimension_numbers = #tpu.dot_dimension_numbers<[1], [0], [0], [1], [0, 0, 1, 1], [], []>} : vector<1x32xf32>, vector<32x128xf32>, vector<1x128xf32> -> vector<1x128xf32>
    %175 = arith.addf %173, %174 : vector<1x128xf32>
    %176 = arith.negf %175 : vector<1x128xf32>
    %177 = math.exp %176 : vector<1x128xf32>
    %cst_29 = arith.constant 1.000000e+00 : f32
    %178 = vector.broadcast %cst_29 : f32 to vector<1x128xf32>
    %179 = arith.addf %178, %177 : vector<1x128xf32>
    %180 = arith.divf %178, %179 : vector<1x128xf32>
    %181 = math.tanh %175 : vector<1x128xf32>
    %182 = vector.extract_strided_slice %180 {offsets = [0, 0], sizes = [1, 32], strides = [1, 1]} : vector<1x128xf32> to vector<1x32xf32>
    %183 = vector.extract_strided_slice %180 {offsets = [0, 32], sizes = [1, 32], strides = [1, 1]} : vector<1x128xf32> to vector<1x32xf32>
    %184 = vector.extract_strided_slice %180 {offsets = [0, 96], sizes = [1, 32], strides = [1, 1]} : vector<1x128xf32> to vector<1x32xf32>
    %185 = vector.extract_strided_slice %181 {offsets = [0, 64], sizes = [1, 32], strides = [1, 1]} : vector<1x128xf32> to vector<1x32xf32>
    %186 = arith.mulf %183, %152 : vector<1x32xf32>
    %187 = arith.mulf %182, %185 : vector<1x32xf32>
    %188 = arith.addf %186, %187 : vector<1x32xf32>
    %189 = math.tanh %188 : vector<1x32xf32>
    %190 = arith.mulf %184, %189 : vector<1x32xf32>
    %191 = vector.extract_strided_slice %6 {offsets = [5, 0], sizes = [1, 128], strides = [1, 1]} : vector<8x128xf32> to vector<1x128xf32>
    %cst_30 = arith.constant dense<0.000000e+00> : vector<1x128xf32>
    %192 = tpu.matmul %172, %8, %cst_30 {dimension_numbers = #tpu.dot_dimension_numbers<[1], [0], [0], [1], [0, 0, 1, 1], [], []>} : vector<1x32xf32>, vector<32x128xf32>, vector<1x128xf32> -> vector<1x128xf32>
    %193 = arith.addf %191, %192 : vector<1x128xf32>
    %194 = arith.negf %193 : vector<1x128xf32>
    %195 = math.exp %194 : vector<1x128xf32>
    %cst_31 = arith.constant 1.000000e+00 : f32
    %196 = vector.broadcast %cst_31 : f32 to vector<1x128xf32>
    %197 = arith.addf %196, %195 : vector<1x128xf32>
    %198 = arith.divf %196, %197 : vector<1x128xf32>
    %199 = math.tanh %193 : vector<1x128xf32>
    %200 = vector.extract_strided_slice %198 {offsets = [0, 0], sizes = [1, 32], strides = [1, 1]} : vector<1x128xf32> to vector<1x32xf32>
    %201 = vector.extract_strided_slice %198 {offsets = [0, 32], sizes = [1, 32], strides = [1, 1]} : vector<1x128xf32> to vector<1x32xf32>
    %202 = vector.extract_strided_slice %198 {offsets = [0, 96], sizes = [1, 32], strides = [1, 1]} : vector<1x128xf32> to vector<1x32xf32>
    %203 = vector.extract_strided_slice %199 {offsets = [0, 64], sizes = [1, 32], strides = [1, 1]} : vector<1x128xf32> to vector<1x32xf32>
    %204 = arith.mulf %201, %170 : vector<1x32xf32>
    %205 = arith.mulf %200, %203 : vector<1x32xf32>
    %206 = arith.addf %204, %205 : vector<1x32xf32>
    %207 = math.tanh %206 : vector<1x32xf32>
    %208 = arith.mulf %202, %207 : vector<1x32xf32>
    %209 = vector.extract_strided_slice %7 {offsets = [2, 0], sizes = [1, 128], strides = [1, 1]} : vector<8x128xf32> to vector<1x128xf32>
    %cst_32 = arith.constant dense<0.000000e+00> : vector<1x128xf32>
    %210 = tpu.matmul %190, %9, %cst_32 {dimension_numbers = #tpu.dot_dimension_numbers<[1], [0], [0], [1], [0, 0, 1, 1], [], []>} : vector<1x32xf32>, vector<32x128xf32>, vector<1x128xf32> -> vector<1x128xf32>
    %211 = arith.addf %209, %210 : vector<1x128xf32>
    %212 = arith.negf %211 : vector<1x128xf32>
    %213 = math.exp %212 : vector<1x128xf32>
    %cst_33 = arith.constant 1.000000e+00 : f32
    %214 = vector.broadcast %cst_33 : f32 to vector<1x128xf32>
    %215 = arith.addf %214, %213 : vector<1x128xf32>
    %216 = arith.divf %214, %215 : vector<1x128xf32>
    %217 = math.tanh %211 : vector<1x128xf32>
    %218 = vector.extract_strided_slice %216 {offsets = [0, 0], sizes = [1, 32], strides = [1, 1]} : vector<1x128xf32> to vector<1x32xf32>
    %219 = vector.extract_strided_slice %216 {offsets = [0, 32], sizes = [1, 32], strides = [1, 1]} : vector<1x128xf32> to vector<1x32xf32>
    %220 = vector.extract_strided_slice %216 {offsets = [0, 96], sizes = [1, 32], strides = [1, 1]} : vector<1x128xf32> to vector<1x32xf32>
    %221 = vector.extract_strided_slice %217 {offsets = [0, 64], sizes = [1, 32], strides = [1, 1]} : vector<1x128xf32> to vector<1x32xf32>
    %222 = arith.mulf %219, %188 : vector<1x32xf32>
    %223 = arith.mulf %218, %221 : vector<1x32xf32>
    %224 = arith.addf %222, %223 : vector<1x32xf32>
    %225 = math.tanh %224 : vector<1x32xf32>
    %226 = arith.mulf %220, %225 : vector<1x32xf32>
    %227 = vector.extract_strided_slice %6 {offsets = [6, 0], sizes = [1, 128], strides = [1, 1]} : vector<8x128xf32> to vector<1x128xf32>
    %cst_34 = arith.constant dense<0.000000e+00> : vector<1x128xf32>
    %228 = tpu.matmul %208, %8, %cst_34 {dimension_numbers = #tpu.dot_dimension_numbers<[1], [0], [0], [1], [0, 0, 1, 1], [], []>} : vector<1x32xf32>, vector<32x128xf32>, vector<1x128xf32> -> vector<1x128xf32>
    %229 = arith.addf %227, %228 : vector<1x128xf32>
    %230 = arith.negf %229 : vector<1x128xf32>
    %231 = math.exp %230 : vector<1x128xf32>
    %cst_35 = arith.constant 1.000000e+00 : f32
    %232 = vector.broadcast %cst_35 : f32 to vector<1x128xf32>
    %233 = arith.addf %232, %231 : vector<1x128xf32>
    %234 = arith.divf %232, %233 : vector<1x128xf32>
    %235 = math.tanh %229 : vector<1x128xf32>
    %236 = vector.extract_strided_slice %234 {offsets = [0, 0], sizes = [1, 32], strides = [1, 1]} : vector<1x128xf32> to vector<1x32xf32>
    %237 = vector.extract_strided_slice %234 {offsets = [0, 32], sizes = [1, 32], strides = [1, 1]} : vector<1x128xf32> to vector<1x32xf32>
    %238 = vector.extract_strided_slice %234 {offsets = [0, 96], sizes = [1, 32], strides = [1, 1]} : vector<1x128xf32> to vector<1x32xf32>
    %239 = vector.extract_strided_slice %235 {offsets = [0, 64], sizes = [1, 32], strides = [1, 1]} : vector<1x128xf32> to vector<1x32xf32>
    %240 = arith.mulf %237, %206 : vector<1x32xf32>
    %241 = arith.mulf %236, %239 : vector<1x32xf32>
    %242 = arith.addf %240, %241 : vector<1x32xf32>
    %243 = math.tanh %242 : vector<1x32xf32>
    %244 = arith.mulf %238, %243 : vector<1x32xf32>
    %245 = vector.extract_strided_slice %7 {offsets = [1, 0], sizes = [1, 128], strides = [1, 1]} : vector<8x128xf32> to vector<1x128xf32>
    %cst_36 = arith.constant dense<0.000000e+00> : vector<1x128xf32>
    %246 = tpu.matmul %226, %9, %cst_36 {dimension_numbers = #tpu.dot_dimension_numbers<[1], [0], [0], [1], [0, 0, 1, 1], [], []>} : vector<1x32xf32>, vector<32x128xf32>, vector<1x128xf32> -> vector<1x128xf32>
    %247 = arith.addf %245, %246 : vector<1x128xf32>
    %248 = arith.negf %247 : vector<1x128xf32>
    %249 = math.exp %248 : vector<1x128xf32>
    %cst_37 = arith.constant 1.000000e+00 : f32
    %250 = vector.broadcast %cst_37 : f32 to vector<1x128xf32>
    %251 = arith.addf %250, %249 : vector<1x128xf32>
    %252 = arith.divf %250, %251 : vector<1x128xf32>
    %253 = math.tanh %247 : vector<1x128xf32>
    %254 = vector.extract_strided_slice %252 {offsets = [0, 0], sizes = [1, 32], strides = [1, 1]} : vector<1x128xf32> to vector<1x32xf32>
    %255 = vector.extract_strided_slice %252 {offsets = [0, 32], sizes = [1, 32], strides = [1, 1]} : vector<1x128xf32> to vector<1x32xf32>
    %256 = vector.extract_strided_slice %252 {offsets = [0, 96], sizes = [1, 32], strides = [1, 1]} : vector<1x128xf32> to vector<1x32xf32>
    %257 = vector.extract_strided_slice %253 {offsets = [0, 64], sizes = [1, 32], strides = [1, 1]} : vector<1x128xf32> to vector<1x32xf32>
    %258 = arith.mulf %255, %224 : vector<1x32xf32>
    %259 = arith.mulf %254, %257 : vector<1x32xf32>
    %260 = arith.addf %258, %259 : vector<1x32xf32>
    %261 = math.tanh %260 : vector<1x32xf32>
    %262 = arith.mulf %256, %261 : vector<1x32xf32>
    %263 = vector.extract_strided_slice %6 {offsets = [7, 0], sizes = [1, 128], strides = [1, 1]} : vector<8x128xf32> to vector<1x128xf32>
    %cst_38 = arith.constant dense<0.000000e+00> : vector<1x128xf32>
    %264 = tpu.matmul %244, %8, %cst_38 {dimension_numbers = #tpu.dot_dimension_numbers<[1], [0], [0], [1], [0, 0, 1, 1], [], []>} : vector<1x32xf32>, vector<32x128xf32>, vector<1x128xf32> -> vector<1x128xf32>
    %265 = arith.addf %263, %264 : vector<1x128xf32>
    %266 = arith.negf %265 : vector<1x128xf32>
    %267 = math.exp %266 : vector<1x128xf32>
    %cst_39 = arith.constant 1.000000e+00 : f32
    %268 = vector.broadcast %cst_39 : f32 to vector<1x128xf32>
    %269 = arith.addf %268, %267 : vector<1x128xf32>
    %270 = arith.divf %268, %269 : vector<1x128xf32>
    %271 = math.tanh %265 : vector<1x128xf32>
    %272 = vector.extract_strided_slice %270 {offsets = [0, 0], sizes = [1, 32], strides = [1, 1]} : vector<1x128xf32> to vector<1x32xf32>
    %273 = vector.extract_strided_slice %270 {offsets = [0, 32], sizes = [1, 32], strides = [1, 1]} : vector<1x128xf32> to vector<1x32xf32>
    %274 = vector.extract_strided_slice %270 {offsets = [0, 96], sizes = [1, 32], strides = [1, 1]} : vector<1x128xf32> to vector<1x32xf32>
    %275 = vector.extract_strided_slice %271 {offsets = [0, 64], sizes = [1, 32], strides = [1, 1]} : vector<1x128xf32> to vector<1x32xf32>
    %276 = arith.mulf %273, %242 : vector<1x32xf32>
    %277 = arith.mulf %272, %275 : vector<1x32xf32>
    %278 = arith.addf %276, %277 : vector<1x32xf32>
    %279 = math.tanh %278 : vector<1x32xf32>
    %280 = arith.mulf %274, %279 : vector<1x32xf32>
    %281 = vector.extract_strided_slice %7 {offsets = [0, 0], sizes = [1, 128], strides = [1, 1]} : vector<8x128xf32> to vector<1x128xf32>
    %cst_40 = arith.constant dense<0.000000e+00> : vector<1x128xf32>
    %282 = tpu.matmul %262, %9, %cst_40 {dimension_numbers = #tpu.dot_dimension_numbers<[1], [0], [0], [1], [0, 0, 1, 1], [], []>} : vector<1x32xf32>, vector<32x128xf32>, vector<1x128xf32> -> vector<1x128xf32>
    %283 = arith.addf %281, %282 : vector<1x128xf32>
    %284 = arith.negf %283 : vector<1x128xf32>
    %285 = math.exp %284 : vector<1x128xf32>
    %cst_41 = arith.constant 1.000000e+00 : f32
    %286 = vector.broadcast %cst_41 : f32 to vector<1x128xf32>
    %287 = arith.addf %286, %285 : vector<1x128xf32>
    %288 = arith.divf %286, %287 : vector<1x128xf32>
    %289 = math.tanh %283 : vector<1x128xf32>
    %290 = vector.extract_strided_slice %288 {offsets = [0, 0], sizes = [1, 32], strides = [1, 1]} : vector<1x128xf32> to vector<1x32xf32>
    %291 = vector.extract_strided_slice %288 {offsets = [0, 32], sizes = [1, 32], strides = [1, 1]} : vector<1x128xf32> to vector<1x32xf32>
    %292 = vector.extract_strided_slice %288 {offsets = [0, 96], sizes = [1, 32], strides = [1, 1]} : vector<1x128xf32> to vector<1x32xf32>
    %293 = vector.extract_strided_slice %289 {offsets = [0, 64], sizes = [1, 32], strides = [1, 1]} : vector<1x128xf32> to vector<1x32xf32>
    %294 = arith.mulf %291, %260 : vector<1x32xf32>
    %295 = arith.mulf %290, %293 : vector<1x32xf32>
    %296 = arith.addf %294, %295 : vector<1x32xf32>
    %297 = math.tanh %296 : vector<1x32xf32>
    %298 = arith.mulf %292, %297 : vector<1x32xf32>
    %299 = tpu.concatenate %28, %64, %100, %136, %172, %208, %244, %280 in 0 : vector<1x32xf32>, vector<1x32xf32>, vector<1x32xf32>, vector<1x32xf32>, vector<1x32xf32>, vector<1x32xf32>, vector<1x32xf32>, vector<1x32xf32> -> vector<8x32xf32>
    %300 = tpu.concatenate %298, %262, %226, %190, %154, %118, %82, %46 in 0 : vector<1x32xf32>, vector<1x32xf32>, vector<1x32xf32>, vector<1x32xf32>, vector<1x32xf32>, vector<1x32xf32>, vector<1x32xf32>, vector<1x32xf32> -> vector<8x32xf32>
    %301 = tpu.concatenate %299, %300 in 1 : vector<8x32xf32>, vector<8x32xf32> -> vector<8x64xf32>
    %c0_42 = arith.constant 0 : index
    %c0_43 = arith.constant 0 : index
    %302 = vector.load %arg5[%c0_42, %c0_43] : memref<64x8xf32, #tpu.memory_space<vmem>>, vector<64x8xf32>
    %cst_44 = arith.constant dense<0.000000e+00> : vector<8x8xf32>
    %303 = tpu.matmul %301, %302, %cst_44 {dimension_numbers = #tpu.dot_dimension_numbers<[1], [0], [0], [1], [0, 0, 1, 1], [], []>} : vector<8x64xf32>, vector<64x8xf32>, vector<8x8xf32> -> vector<8x8xf32>
    %c0_45 = arith.constant 0 : index
    %c0_46 = arith.constant 0 : index
    %304 = vector.load %arg6[%c0_45, %c0_46] : memref<1x8xf32, #tpu.memory_space<vmem>>, vector<1x8xf32>
    %305 = vector.broadcast %304 : vector<1x8xf32> to vector<8x8xf32>
    %306 = arith.addf %303, %305 : vector<8x8xf32>
    %cst_47 = arith.constant dense<0xFF800000> : vector<8xf32>
    %307 = vector.multi_reduction <maximumf>, %306, %cst_47 [1] : vector<8x8xf32> to vector<8xf32>
    %308 = vector.shape_cast %307 : vector<8xf32> to vector<8x1xf32>
    %309 = vector.broadcast %308 : vector<8x1xf32> to vector<8x8xf32>
    %310 = arith.subf %306, %309 : vector<8x8xf32>
    %311 = math.exp %310 : vector<8x8xf32>
    %cst_48 = arith.constant dense<0.000000e+00> : vector<8xf32>
    %312 = vector.multi_reduction <add>, %311, %cst_48 [1] : vector<8x8xf32> to vector<8xf32>
    %313 = vector.shape_cast %312 : vector<8xf32> to vector<8x1xf32>
    %314 = math.log %313 : vector<8x1xf32>
    %315 = vector.broadcast %314 : vector<8x1xf32> to vector<8x8xf32>
    %316 = arith.subf %310, %315 : vector<8x8xf32>
    %c0_49 = arith.constant 0 : index
    %c0_50 = arith.constant 0 : index
    %317 = vector.load %arg7[%c0_49, %c0_50] : memref<8x8xf32, #tpu.memory_space<vmem>>, vector<8x8xf32>
    tpu.vector_store %arg7[%c0_49, %c0_50], %316 {strides = array<i32>} : memref<8x8xf32, #tpu.memory_space<vmem>>, vector<8x8xf32>,
    return
  }
}

</mosaic_0001>

<bundles_post_ra>
// kernel: tpu_custom_call.1
= control target key start
LH: loop header
LB: loop body
LE: loop exit
PB: predicated region body
PF: predicated region fallthrough
CT: control target
= control target key end

     0   :  { %12 = vsyncpa [#allocation3], 0  ;;  %s3073_s0 = inlined_call_operand.vmem [shape: f32[8,32], index: 0, kind: input, shape index: {}]   ;;  %s3074_s1 = inlined_call_operand.vmem [shape: f32[32,256], index: 1, kind: input, shape index: {}]   ;;  %s3075_s2 = inlined_call_operand.hbm [shape: f32[1,256], index: 2, kind: input, shape index: {}]   ;;  %s3076_s3 = inlined_call_operand.hbm [shape: f32[32,128], index: 3, kind: input, shape index: {}]   ;;  %s3077_s4 = inlined_call_operand.hbm [shape: f32[32,128], index: 4, kind: input, shape index: {}]   ;;  %s3078_s5 = inlined_call_operand.vmem [shape: f32[64,8], index: 5, kind: input, shape index: {}]   ;;  %s3079_s6 = inlined_call_operand.vmem [shape: f32[1,8], index: 6, kind: input, shape index: {}]   ;;  %s3080_s7 = inlined_call_operand.hbm [shape: f32[8,8], index: 7, kind: output, shape index: {}]  }
   0x1   :  { %13 = vsyncpa [#allocation6], 0 }
   0x2   :  { %14 = vsyncpa [#allocation4], 0  ;;  %s2558_s24 = smov [#allocation5]  }
   0x3   :  { %s34_s25 = sshll.u32 %s2558_s24, 4  ;;  %s35_s25 = int_to_ptr.vmem [resolvable:$true] %s34_s25 }
   0x4   :  { %s2480_s26 = scalar_lea.vmem %s35_s25, 512  ;;  %p2485_p1 = scmp.lt.s32.totalorder %s35_s25, %s35_s25 }
   0x5   :  { %p2481_p0 = scmp.ne.s32.totalorder %s35_s25, %s2480_s26  ;;  %p2486_p2 = scmp.lt.s32.totalorder %s2480_s26, %s2480_s26 }
   0x7   :  { %p2487_p3 = por %p2486_p2, %p2485_p1 }
   0x9   :  { %p2488_p4 = pnand %p2487_p3, %p2481_p0 }
   0xb   :  { %2491 = shalt.err (!%p2488_p4)
}
   0xc   :  { %s2559_s27 = smov 128   ;;  %s2560_s28 = smov 8  }
   0xd   :  { %40 = dma.hbm_to_vmem [thread:$0]  %s3076_s3, 512, %s35_s25, [#allocation6], %s2559_s27, %s2559_s27, %s2560_s28  }
   0xe   :  { %s2561_s8 = smov [#allocation2]   ;;  %s2562_s10 = smov [#allocation7]  }
   0xf   :  { %s25_s9 = sshll.u32 %s2561_s8, 4  ;;  %s46_s11 = sshll.u32 %s2562_s10, 4  ;;  %s26_s9 = int_to_ptr.vmem [resolvable:$true] %s25_s9  ;;  %s47_s11 = int_to_ptr.vmem [resolvable:$true] %s46_s11 }
  0x10   :  { %s2500_s12 = scalar_lea.vmem %s26_s9, 32  ;;  %p2505_p6 = scmp.lt.s32.totalorder %s26_s9, %s26_s9 }
  0x11   :  { %p2501_p5 = scmp.ne.s32.totalorder %s26_s9, %s2500_s12  ;;  %p2506_p7 = scmp.lt.s32.totalorder %s2500_s12, %s2500_s12 }
  0x13   :  { %p2507_p8 = por %p2506_p7, %p2505_p6 }
  0x15   :  { %p2508_p9 = pnand %p2507_p8, %p2501_p5 }
  0x17   :  { %2511 = shalt.err (!%p2508_p9)
}
  0x18   :  { %28 = dma.hbm_to_vmem [thread:$0]  %s3075_s2, 32, %s26_s9, [#allocation3]  }
  0x19   :  { %s2520_s15 = scalar_lea.vmem %s47_s11, 512  ;;  %p2525_p11 = scmp.lt.s32.totalorder %s47_s11, %s47_s11 }
  0x1a   :  { %p2521_p10 = scmp.ne.s32.totalorder %s47_s11, %s2520_s15  ;;  %p2526_p12 = scmp.lt.s32.totalorder %s2520_s15, %s2520_s15 }
  0x1c   :  { %p2527_p13 = por %p2526_p12, %p2525_p11 }
  0x1e   :  { %p2528_p0 = pnand %p2527_p13, %p2521_p10 }
  0x20   :  { %2531 = shalt.err (!%p2528_p0)
}
  0x21   :  { %52 = dma.hbm_to_vmem [thread:$0]  %s3077_s4, 512, %s47_s11, [#allocation6], %s2559_s27, %s2559_s27, %s2560_s28  }
  0x22   :  { %2552 = dma.done.wait [#allocation3], 32  }
  0x23   :  { %2553 = vsyncadd [#allocation3], 4294967264 }
  0x24   :  { %2554 = dma.done.wait [#allocation6], 1024  }
  0x25   :  { %2555 = vsyncadd [#allocation6], 4294966272  ;;  %v2563_v0 = vmov 0.0   ;;  %vm2564_vm0 = vmmov 0   ;;  %v74_v1 = vld [vmem:[%s3074_s1 + $0x38] sm:$0xff]  ;;  %v73_v2 = vld [vmem:[%s3074_s1 + $0x30] sm:$0xff]  ;;  %v77_v18 = vlaneseq }
  0x26   :  { %2131 = vmatprep.subr.mxu1 %v2563_v0  ;;  %155 = vmatprep.mubr.f32.mxu0 %v2563_v0  ;;  %v72_v3 = vld [vmem:[%s3074_s1 + $0x28] sm:$0xff]  ;;  %v71_v4 = vld [vmem:[%s3074_s1 + $0x20] sm:$0xff]  ;;  %v70_v6 = vld [vmem:[%s3074_s1 + $0x18] sm:$0xff]  ;;  %vm87_vm1 = vcmask 261120   ;;  %vm1860_vm2 = vcmask 1040384   ;;  %vm1862_vm3 = vcmask 1041408  }
  0x27   :  { %2139 = vmatprep.mubr.msk.f32.mxu1 %vm2564_vm0, %v2563_v0  ;;  %115 = vmatprep.subr.mxu0 %v74_v1  ;;  %v2633_v5 = vld [vmem:[#allocation5 + $0x18] sm:$0xff]  ;;  %v2639_v7 = vld [vmem:[#allocation5 + $0x10] sm:$0xff]  ;;  %v2645_v9 = vld [vmem:[#allocation5 + $0x8] sm:$0xff]  ;;  %v78_v19 = vshrl.u32 %v77_v18, 7  ;;  %vm1864_vm4 = vcmask 1042432   ;;  %vm1866_vm5 = vcmask 1043456  }
  0x28   :  { %116 = vmatpush1.msra.mxu0 %v73_v2  ;;  %2132 = vmatpush3.msra.mxu1 %v2633_v5  ;;  %v69_v8 = vld [vmem:[%s3074_s1 + $0x10] sm:$0xff]  ;;  %v68_v10 = vld [vmem:[%s3074_s1 + $0x8] sm:$0xff]  ;;  %v67_v11 = vld [vmem:[%s3074_s1] sm:$0xff]  ;;  %s2566_s1 = smov 32   ;;  %vm1868_vm6 = vcmask 1044480   ;;  %vm1870_vm7 = vcmask 1045504  }
  0x29   :  { %117 = vmatprep.subr.mxu0 %v72_v3  ;;  %2133 = vmatprep.subr.mxu1 %v2563_v0  ;;  %v2655_v12 = vld [vmem:[#allocation5] sm:$0xff]  ;;  %v2662_v14 = vld [vmem:[#allocation7 + $0x18] sm:$0xff]  ;;  %v2667_v15 = vld [vmem:[#allocation7 + $0x10] sm:$0xff]  ;;  %v79_v20 = vsub.s32 0, %v78_v19  ;;  %v83_v21 = vsub.s32 1, %v78_v19  ;;  %vm1872_vm8 = vcmask 1046528  }
  0x2a   :  { %118 = vmatpush1.msra.mxu0 %v71_v4  ;;  %2134 = vmatpush3.msra.mxu1 %v2639_v7  ;;  %v66_v13 = vld [vmem:[%s3073_s0] sm:$0xff]  ;;  %v2672_v16 = vld [vmem:[#allocation7 + $0x8] sm:$0xff]  ;;  %s2565_s0 = smov 64   ;;  %vm1905_vm9 = vcmask 523264   ;;  %vm1979_vm10 = vcmask 64512   ;;  %s2567_s24 = smov [#allocation8]  }
  0x2b   :  { %119 = vmatprep.subr.mxu0 %v70_v6  ;;  %2135 = vmatprep.subr.mxu1 %v2563_v0  ;;  %v2679_v17 = vld [vmem:[#allocation7] sm:$0xff]  ;;  %v75_v23 = vld [vmem:[#allocation2] sm:$0x3] }
  0x2c   :  { %120 = vmatpush1.msra.mxu0 %v69_v8  ;;  %2136 = vmatpush3.msra.mxu1 %v2645_v9  ;;  %v80_v26 = vrot.slane %v75_v23, %v79_v20  ;;  %v84_v27 = vrot.slane %v75_v23, %v83_v21 }
  0x2d   :  { %121 = vmatprep.subr.mxu0 %v68_v10  ;;  %2137 = vmatprep.subr.mxu1 %v2563_v0 }
  0x2e   :  { %122 = vmatpush1.msra.mxu0 %v67_v11  ;;  %2138 = vmatpush3.msra.mxu1 %v2655_v12 }
  0x2f   :  { %2009 = vmatmul.mubr.msk.f32.vlgmr.msra.gmra.mxu0 %vm87_vm1, %v66_v13  ;;  %2142 = vmatprep.subr.mxu0 %v2563_v0 }
  0x30   :  { %2143 = vmatpush3.msra.mxu0 %v2662_v14  ;;  %2140 = vmatmul.mubr.f32.vlgmr.msra.gmra.mxu1 %v2563_v0 }
  0x31   :  { %2144 = vmatprep.subr.mxu0 %v2563_v0  ;;  %2150 = vmatprep.mubr.msk.f32.mxu0 %vm2564_vm0, %v2563_v0 }
  0x32   :  { %2145 = vmatpush3.msra.mxu0 %v2667_v15  ;;  %2153 = vmatprep.subr.mxu1 %v2563_v0 }
  0x33   :  { %2146 = vmatprep.subr.mxu0 %v2563_v0  ;;  %2154 = vmatpush3.msra.mxu1 %v2633_v5 }
  0x34   :  { %2147 = vmatpush3.msra.mxu0 %v2672_v16  ;;  %2155 = vmatprep.subr.mxu1 %v2563_v0 }
  0x35   :  { %2148 = vmatprep.subr.mxu0 %v2563_v0  ;;  %2156 = vmatpush3.msra.mxu1 %v2639_v7 }
  0x36   :  { %2149 = vmatpush3.msra.mxu0 %v2679_v17  ;;  %2157 = vmatprep.subr.mxu1 %v2563_v0 }
  0x37   :  { %2151 = vmatmul.mubr.f32.vlgmr.msra.gmra.mxu0 %v2563_v0  ;;  %2164 = vmatprep.subr.mxu0 %v2563_v0 }
  0x38   :  { %2165 = vmatpush3.msra.mxu0 %v2662_v14  ;;  %2158 = vmatpush3.msra.mxu1 %v2645_v9 }
  0x39   :  { %2166 = vmatprep.subr.mxu0 %v2563_v0  ;;  %2172 = vmatprep.mubr.msk.f32.mxu0 %vm2564_vm0, %v2563_v0 }
  0x3a   :  { %2167 = vmatpush3.msra.mxu0 %v2667_v15  ;;  %2159 = vmatprep.subr.mxu1 %v2563_v0 }
  0x3b   :  { %2168 = vmatprep.subr.mxu0 %v2563_v0  ;;  %2160 = vmatpush3.msra.mxu1 %v2655_v12 }
  0x3c   :  { %2169 = vmatpush3.msra.mxu0 %v2672_v16  ;;  %2161 = vmatprep.mubr.msk.f32.mxu1 %vm2564_vm0, %v2563_v0 }
  0x3d   :  { %2170 = vmatprep.subr.mxu0 %v2563_v0  ;;  %2175 = vmatprep.subr.mxu1 %v2563_v0 }
  0x3e   :  { %2171 = vmatpush3.msra.mxu0 %v2679_v17 }
  0x3f   :  { %2186 = vmatprep.subr.mxu0 %v2563_v0 }
  0xef   :  { %v157_v24 = vpop.f32.mrf.mxu0 }
  0xf0   :  { %v239_v22 = vpop.f32.mrf.mxu1  ;;  %v2706_v30 = vadd.f32 %v157_v24, %v80_v26 }
  0xf1   :  { %v159_v28 = vpop.f32.mrf.mxu0 }
  0xf2   :  { %v2141_v25 = vpop.f32.mrf.mxu1  ;;  %v2708_v31 = vadd.f32 %v159_v28, %v84_v27  ;;  %v243_v35 = vadd.f32 %v239_v22, %v2706_v30 }
  0xf4   :  { %v2010_v39 = vmul.f32 -1.442695, %v243_v35 }
  0xf7   :  { %v334_v29 = vpop.f32.mrf.mxu0 }
  0xf8   :  { %v339_v32 = vrot.slane %v334_v29, 1 }
  0xf9   :  { %v2152_v33 = vpop.f32.mrf.mxu0 }
  0xfa   :  { %v341_v34 = vadd.f32 %v339_v32, %v2708_v31 }
  0xfc   :  { %2336 = vtanh.f32 %v341_v34  ;;  %v2011_v38 = vmul.f32 -1.442695, %v341_v34 }
  0xfd   :  { %2338 = vtanh.f32 %v243_v35 }
  0xfe   :  { %2340 = vpow2.f32 %v2011_v38 }
  0xff   :  { %2342 = vpow2.f32 %v2010_v39 }
 0x109   :  { %v2337_v36 = vpop.eup %2336 }
 0x10a   :  { %351 = vrot.lane.b32.xlu0 %v2337_v36, %s2565_s0  ;;  %v2339_v37 = vpop.eup %2338 }
 0x10b   :  { %v2341_v40 = vpop.eup %2340 }
 0x10c   :  { %v345_v41 = vadd.f32 1.0, %v2341_v40  ;;  %v2343_v42 = vpop.eup %2342 }
 0x10d   :  { %v247_v43 = vadd.f32 1.0, %v2343_v42 }
 0x10e   :  { %253 = vrot.lane.b32.xlu0 %v2339_v37, %s2565_s0  ;;  %2344 = vrcp.f32 %v345_v41 }
 0x10f   :  { %2346 = vrcp.f32 %v247_v43 }
 0x11b   :  { %v2345_v44 = vpop.eup %2344 }
 0x11c   :  { %v2347_v47 = vpop.eup %2346  ;;  %v349_v50 = vmul.f32 0.0, %v2345_v44 }
 0x11d   :  { %v251_v53 = vmul.f32 0.0, %v2347_v47 }
 0x17c   :  { %v352_v45 = vpop.permute.xlu0 %351 }
 0x17d   :  { %v354_v46 = vmul.f32 %v2345_v44, %v352_v45 }
 0x17f   :  { %356 = vrot.lane.b32.xlu1 %v354_v46, %s2566_s1 }
 0x180   :  { %v254_v48 = vpop.permute.xlu0 %253 }
 0x181   :  { %v256_v49 = vmul.f32 %v2347_v47, %v254_v48 }
 0x183   :  { %258 = vrot.lane.b32.xlu1 %v256_v49, %s2566_s1 }
 0x1f1   :  { %v357_v51 = vpop.permute.xlu1 %356 }
 0x1f2   :  { %v2716_v52 = vadd.f32 %v357_v51, %v349_v50 }
 0x1f4   :  { %2348 = vtanh.f32 %v2716_v52  ;;  %v560_v34 = vrot.slane %v2716_v52, 1 }
 0x1f5   :  { %v259_v54 = vpop.permute.xlu1 %258 }
 0x1f6   :  { %v2719_v55 = vadd.f32 %v259_v54, %v251_v53 }
 0x1f8   :  { %2350 = vtanh.f32 %v2719_v55  ;;  %v453_v36 = vrot.slane %v2719_v55, 7 }
 0x201   :  { %v2349_v56 = vpop.eup %2348 }
 0x202   :  { %362 = vrot.lane.b32.xlu0 %v2349_v56, %s2565_s0 }
 0x205   :  { %v2351_v57 = vpop.eup %2350 }
 0x206   :  { %264 = vrot.lane.b32.xlu1 %v2351_v57, %s2565_s0 }
 0x274   :  { %v363_v58 = vpop.permute.xlu0 %362 }
 0x275   :  { %v2724_v59 = vmul.f32 %v2345_v44, %v363_v58 }
 0x277   :  { %v473_v60 = vrot.slane %v2724_v59, 7 }
 0x278   :  { %v265_v61 = vpop.permute.xlu1 %264 }
 0x279   :  { %v2727_v62 = vmul.f32 %v2347_v47, %v265_v61  ;;  %474 = vrot.lane.b32.xlu0 %v473_v60, %s2566_s1 }
 0x27b   :  { %367 = vrot.lane.b32.xlu1 %v2727_v62, %s2566_s1 }
 0x2eb   :  { %v475_v63 = vpop.permute.xlu0 %474 }
 0x2ec   :  { %2173 = vmatmul.mubr.msk.f32.vlgmr.msra.gmra.mxu0 %vm87_vm1, %v475_v63 }
 0x2ed   :  { %v368_v1 = vpop.permute.xlu1 %367  ;;  %2187 = vmatpush3.msra.mxu0 %v2662_v14  ;;  %2194 = vmatprep.mubr.msk.f32.mxu0 %vm2564_vm0, %v2563_v0 }
 0x2ee   :  { %2162 = vmatmul.mubr.msk.f32.vlgmr.msra.gmra.mxu1 %vm87_vm1, %v368_v1  ;;  %2188 = vmatprep.subr.mxu0 %v2563_v0 }
 0x2ef   :  { %2176 = vmatpush3.msra.mxu1 %v2633_v5  ;;  %2189 = vmatpush3.msra.mxu0 %v2667_v15 }
 0x2f0   :  { %2177 = vmatprep.subr.mxu1 %v2563_v0  ;;  %2190 = vmatprep.subr.mxu0 %v2563_v0 }
 0x2f1   :  { %2178 = vmatpush3.msra.mxu1 %v2639_v7  ;;  %2191 = vmatpush3.msra.mxu0 %v2672_v16 }
 0x2f2   :  { %2179 = vmatprep.subr.mxu1 %v2563_v0  ;;  %2192 = vmatprep.subr.mxu0 %v2563_v0 }
 0x2f3   :  { %2193 = vmatpush3.msra.mxu0 %v2679_v17  ;;  %2180 = vmatpush3.msra.mxu1 %v2645_v9 }
 0x2f4   :  { %2181 = vmatprep.subr.mxu1 %v2563_v0  ;;  %2183 = vmatprep.mubr.msk.f32.mxu1 %vm2564_vm0, %v2563_v0 }
 0x2f5   :  { %2182 = vmatpush3.msra.mxu1 %v2655_v12  ;;  %2208 = vmatprep.subr.mxu0 %v2563_v0 }
 0x2f6   :  { %2197 = vmatprep.subr.mxu1 %v2563_v0 }
 0x3ac   :  { %v544_v2 = vpop.f32.mrf.mxu0 }
 0x3ad   :  { %v549_v3 = vrot.slane %v544_v2, 2 }
 0x3ae   :  { %v437_v4 = vpop.f32.mrf.mxu1  ;;  %v2174_v6 = vpop.f32.mrf.mxu0 }
 0x3af   :  { %v551_v8 = vadd.f32 %v549_v3, %v2708_v31  ;;  %v442_v10 = vrot.slane %v437_v4, 7 }
 0x3b0   :  { %v2163_v11 = vpop.f32.mrf.mxu1 }
 0x3b1   :  { %2352 = vtanh.f32 %v551_v8  ;;  %v444_v13 = vadd.f32 %v442_v10, %v2706_v30  ;;  %v2015_v20 = vmul.f32 -1.442695, %v551_v8 }
 0x3b3   :  { %2354 = vtanh.f32 %v444_v13  ;;  %v2013_v21 = vmul.f32 -1.442695, %v444_v13 }
 0x3b4   :  { %2356 = vpow2.f32 %v2015_v20 }
 0x3b5   :  { %2358 = vpow2.f32 %v2013_v21 }
 0x3be   :  { %v2353_v18 = vpop.eup %2352 }
 0x3bf   :  { %564 = vrot.lane.b32.xlu0 %v2353_v18, %s2565_s0 }
 0x3c0   :  { %v2355_v19 = vpop.eup %2354 }
 0x3c1   :  { %457 = vrot.lane.b32.xlu1 %v2355_v19, %s2565_s0  ;;  %v2357_v22 = vpop.eup %2356 }
 0x3c2   :  { %v2359_v23 = vpop.eup %2358  ;;  %v555_v24 = vadd.f32 1.0, %v2357_v22 }
 0x3c3   :  { %v448_v25 = vadd.f32 1.0, %v2359_v23 }
 0x3c4   :  { %2360 = vrcp.f32 %v555_v24 }
 0x3c5   :  { %2362 = vrcp.f32 %v448_v25 }
 0x3d1   :  { %v2361_v26 = vpop.eup %2360 }
 0x3d2   :  { %v2363_v29 = vpop.eup %2362  ;;  %v562_v35 = vmul.f32 %v2361_v26, %v560_v34 }
 0x3d3   :  { %v455_v39 = vmul.f32 %v2363_v29, %v453_v36 }
 0x431   :  { %v565_v27 = vpop.permute.xlu0 %564 }
 0x432   :  { %v567_v28 = vmul.f32 %v2361_v26, %v565_v27 }
 0x433   :  { %v458_v32 = vpop.permute.xlu1 %457 }
 0x434   :  { %569 = vrot.lane.b32.xlu0 %v567_v28, %s2566_s1  ;;  %v460_v33 = vmul.f32 %v2363_v29, %v458_v32 }
 0x436   :  { %462 = vrot.lane.b32.xlu1 %v460_v33, %s2566_s1 }
 0x4a6   :  { %v570_v37 = vpop.permute.xlu0 %569 }
 0x4a7   :  { %v2762_v38 = vadd.f32 %v570_v37, %v562_v35 }
 0x4a8   :  { %v463_v40 = vpop.permute.xlu1 %462 }
 0x4a9   :  { %2364 = vtanh.f32 %v2762_v38  ;;  %v2765_v41 = vadd.f32 %v463_v40, %v455_v39  ;;  %v774_v21 = vrot.slane %v2762_v38, 1 }
 0x4ab   :  { %2366 = vtanh.f32 %v2765_v41  ;;  %v667_v23 = vrot.slane %v2765_v41, 7 }
 0x4b6   :  { %v2365_v42 = vpop.eup %2364 }
 0x4b7   :  { %575 = vrot.lane.b32.xlu0 %v2365_v42, %s2565_s0 }
 0x4b8   :  { %v2367_v43 = vpop.eup %2366 }
 0x4b9   :  { %468 = vrot.lane.b32.xlu1 %v2367_v43, %s2565_s0 }
 0x529   :  { %v576_v44 = vpop.permute.xlu0 %575 }
 0x52a   :  { %v2770_v45 = vmul.f32 %v2361_v26, %v576_v44 }
 0x52b   :  { %v469_v47 = vpop.permute.xlu1 %468 }
 0x52c   :  { %v687_v46 = vrot.slane %v2770_v45, 6  ;;  %v2773_v48 = vmul.f32 %v2363_v29, %v469_v47 }
 0x52e   :  { %688 = vrot.lane.b32.xlu0 %v687_v46, %s2566_s1  ;;  %v580_v49 = vrot.slane %v2773_v48, 1  ;;  %v1861_v38 = vsel %vm1860_vm2, %v2727_v62, %v2773_v48 }
 0x530   :  { %581 = vrot.lane.b32.xlu1 %v580_v49, %s2566_s1 }
 0x5a0   :  { %v689_v50 = vpop.permute.xlu0 %688 }
 0x5a1   :  { %2195 = vmatmul.mubr.msk.f32.vlgmr.msra.gmra.mxu0 %vm87_vm1, %v689_v50 }
 0x5a2   :  { %2209 = vmatpush3.msra.mxu0 %v2662_v14  ;;  %2216 = vmatprep.mubr.msk.f32.mxu0 %vm2564_vm0, %v2563_v0  ;;  %v582_v51 = vpop.permute.xlu1 %581 }
 0x5a3   :  { %2210 = vmatprep.subr.mxu0 %v2563_v0  ;;  %2184 = vmatmul.mubr.msk.f32.vlgmr.msra.gmra.mxu1 %vm87_vm1, %v582_v51 }
 0x5a4   :  { %2211 = vmatpush3.msra.mxu0 %v2667_v15  ;;  %2198 = vmatpush3.msra.mxu1 %v2633_v5 }
 0x5a5   :  { %2212 = vmatprep.subr.mxu0 %v2563_v0  ;;  %2199 = vmatprep.subr.mxu1 %v2563_v0 }
 0x5a6   :  { %2213 = vmatpush3.msra.mxu0 %v2672_v16  ;;  %2200 = vmatpush3.msra.mxu1 %v2639_v7 }
 0x5a7   :  { %2214 = vmatprep.subr.mxu0 %v2563_v0  ;;  %2201 = vmatprep.subr.mxu1 %v2563_v0 }
 0x5a8   :  { %2215 = vmatpush3.msra.mxu0 %v2679_v17  ;;  %2202 = vmatpush3.msra.mxu1 %v2645_v9 }
 0x5a9   :  { %2205 = vmatprep.mubr.msk.f32.mxu1 %vm2564_vm0, %v2563_v0  ;;  %2203 = vmatprep.subr.mxu1 %v2563_v0 }
 0x5aa   :  { %2230 = vmatprep.subr.mxu0 %v2563_v0  ;;  %2204 = vmatpush3.msra.mxu1 %v2655_v12 }
 0x5ab   :  { %2219 = vmatprep.subr.mxu1 %v2563_v0 }
 0x661   :  { %v758_v52 = vpop.f32.mrf.mxu0 }
 0x662   :  { %v763_v53 = vrot.slane %v758_v52, 3 }
 0x663   :  { %v2196_v54 = vpop.f32.mrf.mxu0  ;;  %v651_v56 = vpop.f32.mrf.mxu1 }
 0x664   :  { %v765_v55 = vadd.f32 %v763_v53, %v2708_v31  ;;  %v656_v57 = vrot.slane %v651_v56, 6 }
 0x665   :  { %v2185_v58 = vpop.f32.mrf.mxu1 }
 0x666   :  { %2368 = vtanh.f32 %v765_v55  ;;  %v658_v60 = vadd.f32 %v656_v57, %v2706_v30  ;;  %v2019_v1 = vmul.f32 -1.442695, %v765_v55 }
 0x668   :  { %2370 = vtanh.f32 %v658_v60  ;;  %v2017_v2 = vmul.f32 -1.442695, %v658_v60 }
 0x669   :  { %2372 = vpow2.f32 %v2019_v1 }
 0x66a   :  { %2374 = vpow2.f32 %v2017_v2 }
 0x673   :  { %v2369_v61 = vpop.eup %2368 }
 0x674   :  { %778 = vrot.lane.b32.xlu0 %v2369_v61, %s2565_s0 }
 0x675   :  { %v2371_v63 = vpop.eup %2370 }
 0x676   :  { %671 = vrot.lane.b32.xlu1 %v2371_v63, %s2565_s0  ;;  %v2373_v3 = vpop.eup %2372 }
 0x677   :  { %v2375_v4 = vpop.eup %2374  ;;  %v769_v6 = vadd.f32 1.0, %v2373_v3 }
 0x678   :  { %v662_v8 = vadd.f32 1.0, %v2375_v4 }
 0x679   :  { %2376 = vrcp.f32 %v769_v6 }
 0x67a   :  { %2378 = vrcp.f32 %v662_v8 }
 0x686   :  { %v2377_v10 = vpop.eup %2376 }
 0x687   :  { %v2379_v18 = vpop.eup %2378  ;;  %v776_v22 = vmul.f32 %v2377_v10, %v774_v21 }
 0x688   :  { %v669_v26 = vmul.f32 %v2379_v18, %v667_v23 }
 0x6e6   :  { %v779_v11 = vpop.permute.xlu0 %778 }
 0x6e7   :  { %v781_v13 = vmul.f32 %v2377_v10, %v779_v11 }
 0x6e8   :  { %v672_v19 = vpop.permute.xlu1 %671 }
 0x6e9   :  { %783 = vrot.lane.b32.xlu0 %v781_v13, %s2566_s1  ;;  %v674_v20 = vmul.f32 %v2379_v18, %v672_v19 }
 0x6eb   :  { %676 = vrot.lane.b32.xlu1 %v674_v20, %s2566_s1 }
 0x75b   :  { %v784_v24 = vpop.permute.xlu0 %783 }
 0x75c   :  { %v2808_v25 = vadd.f32 %v784_v24, %v776_v22 }
 0x75d   :  { %v677_v27 = vpop.permute.xlu1 %676 }
 0x75e   :  { %2380 = vtanh.f32 %v2808_v25  ;;  %v2811_v28 = vadd.f32 %v677_v27, %v669_v26  ;;  %v988_v4 = vrot.slane %v2808_v25, 1 }
 0x760   :  { %2382 = vtanh.f32 %v2811_v28  ;;  %v881_v8 = vrot.slane %v2811_v28, 7 }
 0x76b   :  { %v2381_v29 = vpop.eup %2380 }
 0x76c   :  { %789 = vrot.lane.b32.xlu0 %v2381_v29, %s2565_s0 }
 0x76d   :  { %v2383_v32 = vpop.eup %2382 }
 0x76e   :  { %682 = vrot.lane.b32.xlu1 %v2383_v32, %s2565_s0 }
 0x7de   :  { %v790_v33 = vpop.permute.xlu0 %789 }
 0x7df   :  { %v2816_v34 = vmul.f32 %v2377_v10, %v790_v33 }
 0x7e0   :  { %v683_v36 = vpop.permute.xlu1 %682 }
 0x7e1   :  { %v901_v35 = vrot.slane %v2816_v34, 5  ;;  %v685_v37 = vmul.f32 %v2379_v18, %v683_v36 }
 0x7e3   :  { %902 = vrot.lane.b32.xlu0 %v901_v35, %s2566_s1  ;;  %v794_v39 = vrot.slane %v685_v37, 2  ;;  %v2824_v40 = vsel %vm1862_vm3, %v1861_v38, %v685_v37 }
 0x7e5   :  { %795 = vrot.lane.b32.xlu1 %v794_v39, %s2566_s1 }
 0x855   :  { %v903_v41 = vpop.permute.xlu0 %902 }
 0x856   :  { %2217 = vmatmul.mubr.msk.f32.vlgmr.msra.gmra.mxu0 %vm87_vm1, %v903_v41 }
 0x857   :  { %2231 = vmatpush3.msra.mxu0 %v2662_v14  ;;  %2238 = vmatprep.mubr.msk.f32.mxu0 %vm2564_vm0, %v2563_v0  ;;  %v796_v42 = vpop.permute.xlu1 %795 }
 0x858   :  { %2232 = vmatprep.subr.mxu0 %v2563_v0  ;;  %2206 = vmatmul.mubr.msk.f32.vlgmr.msra.gmra.mxu1 %vm87_vm1, %v796_v42 }
 0x859   :  { %2233 = vmatpush3.msra.mxu0 %v2667_v15  ;;  %2220 = vmatpush3.msra.mxu1 %v2633_v5 }
 0x85a   :  { %2234 = vmatprep.subr.mxu0 %v2563_v0  ;;  %2221 = vmatprep.subr.mxu1 %v2563_v0 }
 0x85b   :  { %2235 = vmatpush3.msra.mxu0 %v2672_v16  ;;  %2222 = vmatpush3.msra.mxu1 %v2639_v7 }
 0x85c   :  { %2236 = vmatprep.subr.mxu0 %v2563_v0  ;;  %2223 = vmatprep.subr.mxu1 %v2563_v0 }
 0x85d   :  { %2237 = vmatpush3.msra.mxu0 %v2679_v17  ;;  %2224 = vmatpush3.msra.mxu1 %v2645_v9 }
 0x85e   :  { %2227 = vmatprep.mubr.msk.f32.mxu1 %vm2564_vm0, %v2563_v0  ;;  %2225 = vmatprep.subr.mxu1 %v2563_v0 }
 0x85f   :  { %2252 = vmatprep.subr.mxu0 %v2563_v0  ;;  %2226 = vmatpush3.msra.mxu1 %v2655_v12 }
 0x860   :  { %2241 = vmatprep.subr.mxu1 %v2563_v0 }
 0x916   :  { %v972_v62 = vpop.f32.mrf.mxu0 }
 0x917   :  { %v977_v43 = vrot.slane %v972_v62, 4 }
 0x918   :  { %v2218_v44 = vpop.f32.mrf.mxu0  ;;  %v865_v47 = vpop.f32.mrf.mxu1 }
 0x919   :  { %v979_v46 = vadd.f32 %v977_v43, %v2708_v31  ;;  %v870_v48 = vrot.slane %v865_v47, 5 }
 0x91a   :  { %v2207_v49 = vpop.f32.mrf.mxu1 }
 0x91b   :  { %2384 = vtanh.f32 %v979_v46  ;;  %v872_v50 = vadd.f32 %v870_v48, %v2706_v30  ;;  %v2023_v53 = vmul.f32 -1.442695, %v979_v46 }
 0x91d   :  { %2386 = vtanh.f32 %v872_v50  ;;  %v2021_v54 = vmul.f32 -1.442695, %v872_v50 }
 0x91e   :  { %2388 = vpow2.f32 %v2023_v53 }
 0x91f   :  { %2390 = vpow2.f32 %v2021_v54 }
 0x928   :  { %v2385_v51 = vpop.eup %2384 }
 0x929   :  { %992 = vrot.lane.b32.xlu0 %v2385_v51, %s2565_s0 }
 0x92a   :  { %v2387_v52 = vpop.eup %2386 }
 0x92b   :  { %885 = vrot.lane.b32.xlu1 %v2387_v52, %s2565_s0  ;;  %v2389_v55 = vpop.eup %2388 }
 0x92c   :  { %v2391_v56 = vpop.eup %2390  ;;  %v983_v57 = vadd.f32 1.0, %v2389_v55 }
 0x92d   :  { %v876_v58 = vadd.f32 1.0, %v2391_v56 }
 0x92e   :  { %2392 = vrcp.f32 %v983_v57 }
 0x92f   :  { %2394 = vrcp.f32 %v876_v58 }
 0x93b   :  { %v2393_v60 = vpop.eup %2392 }
 0x93c   :  { %v2395_v1 = vpop.eup %2394  ;;  %v990_v6 = vmul.f32 %v2393_v60, %v988_v4 }
 0x93d   :  { %v883_v13 = vmul.f32 %v2395_v1, %v881_v8 }
 0x99b   :  { %v993_v61 = vpop.permute.xlu0 %992 }
 0x99c   :  { %v995_v63 = vmul.f32 %v2393_v60, %v993_v61 }
 0x99d   :  { %v886_v2 = vpop.permute.xlu1 %885 }
 0x99e   :  { %997 = vrot.lane.b32.xlu0 %v995_v63, %s2566_s1  ;;  %v888_v3 = vmul.f32 %v2395_v1, %v886_v2 }
 0x9a0   :  { %890 = vrot.lane.b32.xlu1 %v888_v3, %s2566_s1 }
 0xa10   :  { %v998_v10 = vpop.permute.xlu0 %997 }
 0xa11   :  { %v2857_v11 = vadd.f32 %v998_v10, %v990_v6 }
 0xa12   :  { %v891_v18 = vpop.permute.xlu1 %890 }
 0xa13   :  { %2396 = vtanh.f32 %v2857_v11  ;;  %v2860_v19 = vadd.f32 %v891_v18, %v883_v13  ;;  %v1202_v56 = vrot.slane %v2857_v11, 1 }
 0xa15   :  { %2398 = vtanh.f32 %v2860_v19  ;;  %v1095_v58 = vrot.slane %v2860_v19, 7 }
 0xa20   :  { %v2397_v20 = vpop.eup %2396 }
 0xa21   :  { %1003 = vrot.lane.b32.xlu0 %v2397_v20, %s2565_s0 }
 0xa22   :  { %v2399_v21 = vpop.eup %2398 }
 0xa23   :  { %896 = vrot.lane.b32.xlu1 %v2399_v21, %s2565_s0 }
 0xa93   :  { %v1004_v22 = vpop.permute.xlu0 %1003 }
 0xa94   :  { %v2865_v23 = vmul.f32 %v2393_v60, %v1004_v22 }
 0xa95   :  { %v897_v25 = vpop.permute.xlu1 %896 }
 0xa96   :  { %v1115_v24 = vrot.slane %v2865_v23, 4  ;;  %v899_v26 = vmul.f32 %v2395_v1, %v897_v25 }
 0xa98   :  { %1116 = vrot.lane.b32.xlu0 %v1115_v24, %s2566_s1  ;;  %v1008_v27 = vrot.slane %v899_v26, 3  ;;  %v2871_v28 = vsel %vm1864_vm4, %v2824_v40, %v899_v26 }
 0xa9a   :  { %1009 = vrot.lane.b32.xlu1 %v1008_v27, %s2566_s1 }
 0xb0a   :  { %v1117_v29 = vpop.permute.xlu0 %1116 }
 0xb0b   :  { %2239 = vmatmul.mubr.msk.f32.vlgmr.msra.gmra.mxu0 %vm87_vm1, %v1117_v29 }
 0xb0c   :  { %2253 = vmatpush3.msra.mxu0 %v2662_v14  ;;  %2260 = vmatprep.mubr.msk.f32.mxu0 %vm2564_vm0, %v2563_v0  ;;  %v1010_v32 = vpop.permute.xlu1 %1009 }
 0xb0d   :  { %2254 = vmatprep.subr.mxu0 %v2563_v0  ;;  %2228 = vmatmul.mubr.msk.f32.vlgmr.msra.gmra.mxu1 %vm87_vm1, %v1010_v32 }
 0xb0e   :  { %2255 = vmatpush3.msra.mxu0 %v2667_v15  ;;  %2242 = vmatpush3.msra.mxu1 %v2633_v5 }
 0xb0f   :  { %2256 = vmatprep.subr.mxu0 %v2563_v0  ;;  %2243 = vmatprep.subr.mxu1 %v2563_v0 }
 0xb10   :  { %2257 = vmatpush3.msra.mxu0 %v2672_v16  ;;  %2244 = vmatpush3.msra.mxu1 %v2639_v7 }
 0xb11   :  { %2258 = vmatprep.subr.mxu0 %v2563_v0  ;;  %2245 = vmatprep.subr.mxu1 %v2563_v0 }
 0xb12   :  { %2259 = vmatpush3.msra.mxu0 %v2679_v17  ;;  %2246 = vmatpush3.msra.mxu1 %v2645_v9 }
 0xb13   :  { %2249 = vmatprep.mubr.msk.f32.mxu1 %vm2564_vm0, %v2563_v0  ;;  %2247 = vmatprep.subr.mxu1 %v2563_v0 }
 0xb14   :  { %2274 = vmatprep.subr.mxu0 %v2563_v0  ;;  %2248 = vmatpush3.msra.mxu1 %v2655_v12 }
 0xb15   :  { %2263 = vmatprep.subr.mxu1 %v2563_v0 }
 0xbcb   :  { %v1186_v33 = vpop.f32.mrf.mxu0 }
 0xbcc   :  { %v1191_v35 = vrot.slane %v1186_v33, 5 }
 0xbcd   :  { %v2240_v36 = vpop.f32.mrf.mxu0  ;;  %v1079_v38 = vpop.f32.mrf.mxu1 }
 0xbce   :  { %v1193_v37 = vadd.f32 %v1191_v35, %v2708_v31  ;;  %v1084_v39 = vrot.slane %v1079_v38, 4 }
 0xbcf   :  { %v2229_v40 = vpop.f32.mrf.mxu1 }
 0xbd0   :  { %2400 = vtanh.f32 %v1193_v37  ;;  %v1086_v41 = vadd.f32 %v1084_v39, %v2706_v30  ;;  %v2027_v43 = vmul.f32 -1.442695, %v1193_v37 }
 0xbd2   :  { %2402 = vtanh.f32 %v1086_v41  ;;  %v2025_v44 = vmul.f32 -1.442695, %v1086_v41 }
 0xbd3   :  { %2404 = vpow2.f32 %v2027_v43 }
 0xbd4   :  { %2406 = vpow2.f32 %v2025_v44 }
 0xbdd   :  { %v2401_v42 = vpop.eup %2400 }
 0xbde   :  { %1206 = vrot.lane.b32.xlu0 %v2401_v42, %s2565_s0 }
 0xbdf   :  { %v2403_v62 = vpop.eup %2402 }
 0xbe0   :  { %1099 = vrot.lane.b32.xlu1 %v2403_v62, %s2565_s0  ;;  %v2405_v46 = vpop.eup %2404 }
 0xbe1   :  { %v2407_v47 = vpop.eup %2406  ;;  %v1197_v48 = vadd.f32 1.0, %v2405_v46 }
 0xbe2   :  { %v1090_v49 = vadd.f32 1.0, %v2407_v47 }
 0xbe3   :  { %2408 = vrcp.f32 %v1197_v48 }
 0xbe4   :  { %2410 = vrcp.f32 %v1090_v49 }
 0xbf0   :  { %v2409_v50 = vpop.eup %2408 }
 0xbf1   :  { %v2411_v53 = vpop.eup %2410  ;;  %v1204_v57 = vmul.f32 %v2409_v50, %v1202_v56 }
 0xbf2   :  { %v1097_v63 = vmul.f32 %v2411_v53, %v1095_v58 }
 0xc50   :  { %v1207_v51 = vpop.permute.xlu0 %1206 }
 0xc51   :  { %v1209_v52 = vmul.f32 %v2409_v50, %v1207_v51 }
 0xc52   :  { %v1100_v54 = vpop.permute.xlu1 %1099 }
 0xc53   :  { %1211 = vrot.lane.b32.xlu0 %v1209_v52, %s2566_s1  ;;  %v1102_v55 = vmul.f32 %v2411_v53, %v1100_v54 }
 0xc55   :  { %1104 = vrot.lane.b32.xlu1 %v1102_v55, %s2566_s1 }
 0xcc5   :  { %v1212_v60 = vpop.permute.xlu0 %1211 }
 0xcc6   :  { %v2904_v61 = vadd.f32 %v1212_v60, %v1204_v57 }
 0xcc7   :  { %v1105_v1 = vpop.permute.xlu1 %1104 }
 0xcc8   :  { %2412 = vtanh.f32 %v2904_v61  ;;  %v2907_v2 = vadd.f32 %v1105_v1, %v1097_v63  ;;  %v1416_v43 = vrot.slane %v2904_v61, 1 }
 0xcca   :  { %2414 = vtanh.f32 %v2907_v2  ;;  %v1309_v46 = vrot.slane %v2907_v2, 7  ;;  %v2468_v2 = vld [vmem:[#allocation5 + $0x18] sm:$0xff] }
 0xcd5   :  { %v2413_v3 = vpop.eup %2412 }
 0xcd6   :  { %1217 = vrot.lane.b32.xlu0 %v2413_v3, %s2565_s0  ;;  %v2469_v3 = vld [vmem:[#allocation5 + $0x10] sm:$0xff] }
 0xcd7   :  { %v2415_v4 = vpop.eup %2414 }
 0xcd8   :  { %1110 = vrot.lane.b32.xlu1 %v2415_v4, %s2565_s0 }
 0xd48   :  { %v1218_v6 = vpop.permute.xlu0 %1217 }
 0xd49   :  { %v2912_v8 = vmul.f32 %v2409_v50, %v1218_v6 }
 0xd4a   :  { %v1111_v11 = vpop.permute.xlu1 %1110 }
 0xd4b   :  { %v1329_v10 = vrot.slane %v2912_v8, 3  ;;  %v1113_v13 = vmul.f32 %v2411_v53, %v1111_v11 }
 0xd4d   :  { %1330 = vrot.lane.b32.xlu0 %v1329_v10, %s2566_s1  ;;  %v1222_v18 = vrot.slane %v1113_v13, 4  ;;  %v2918_v19 = vsel %vm1866_vm5, %v2871_v28, %v1113_v13 }
 0xd4f   :  { %1223 = vrot.lane.b32.xlu1 %v1222_v18, %s2566_s1 }
 0xdbf   :  { %v1331_v20 = vpop.permute.xlu0 %1330 }
 0xdc0   :  { %2261 = vmatmul.mubr.msk.f32.vlgmr.msra.gmra.mxu0 %vm87_vm1, %v1331_v20 }
 0xdc1   :  { %2275 = vmatpush3.msra.mxu0 %v2662_v14  ;;  %2282 = vmatprep.mubr.msk.f32.mxu0 %vm2564_vm0, %v2563_v0  ;;  %v1224_v21 = vpop.permute.xlu1 %1223 }
 0xdc2   :  { %2276 = vmatprep.subr.mxu0 %v2563_v0  ;;  %2250 = vmatmul.mubr.msk.f32.vlgmr.msra.gmra.mxu1 %vm87_vm1, %v1224_v21 }
 0xdc3   :  { %2277 = vmatpush3.msra.mxu0 %v2667_v15  ;;  %2264 = vmatpush3.msra.mxu1 %v2633_v5 }
 0xdc4   :  { %2278 = vmatprep.subr.mxu0 %v2563_v0  ;;  %2265 = vmatprep.subr.mxu1 %v2563_v0 }
 0xdc5   :  { %2279 = vmatpush3.msra.mxu0 %v2672_v16  ;;  %2266 = vmatpush3.msra.mxu1 %v2639_v7 }
 0xdc6   :  { %2280 = vmatprep.subr.mxu0 %v2563_v0  ;;  %2267 = vmatprep.subr.mxu1 %v2563_v0 }
 0xdc7   :  { %2281 = vmatpush3.msra.mxu0 %v2679_v17  ;;  %2268 = vmatpush3.msra.mxu1 %v2645_v9 }
 0xdc8   :  { %2271 = vmatprep.mubr.msk.f32.mxu1 %vm2564_vm0, %v2563_v0  ;;  %2269 = vmatprep.subr.mxu1 %v2563_v0 }
 0xdc9   :  { %2296 = vmatprep.subr.mxu0 %v2563_v0  ;;  %2270 = vmatpush3.msra.mxu1 %v2655_v12 }
 0xdca   :  { %2285 = vmatprep.subr.mxu1 %v2563_v0 }
 0xe80   :  { %v1400_v5 = vpop.f32.mrf.mxu0 }
 0xe81   :  { %v1405_v7 = vrot.slane %v1400_v5, 6 }
 0xe82   :  { %v2262_v22 = vpop.f32.mrf.mxu0  ;;  %v1293_v25 = vpop.f32.mrf.mxu1 }
 0xe83   :  { %v1407_v24 = vadd.f32 %v1405_v7, %v2708_v31  ;;  %v1298_v26 = vrot.slane %v1293_v25, 3 }
 0xe84   :  { %v2251_v9 = vpop.f32.mrf.mxu1 }
 0xe85   :  { %2416 = vtanh.f32 %v1407_v24  ;;  %v1300_v27 = vadd.f32 %v1298_v26, %v2706_v30  ;;  %v2031_v12 = vmul.f32 -1.442695, %v1407_v24 }
 0xe87   :  { %2418 = vtanh.f32 %v1300_v27  ;;  %v2029_v32 = vmul.f32 -1.442695, %v1300_v27 }
 0xe88   :  { %2420 = vpow2.f32 %v2031_v12 }
 0xe89   :  { %2422 = vpow2.f32 %v2029_v32 }
 0xe92   :  { %v2417_v28 = vpop.eup %2416 }
 0xe93   :  { %1420 = vrot.lane.b32.xlu0 %v2417_v28, %s2565_s0 }
 0xe94   :  { %v2419_v29 = vpop.eup %2418 }
 0xe95   :  { %1313 = vrot.lane.b32.xlu1 %v2419_v29, %s2565_s0  ;;  %v2421_v33 = vpop.eup %2420 }
 0xe96   :  { %v2423_v35 = vpop.eup %2422  ;;  %v1411_v36 = vadd.f32 1.0, %v2421_v33 }
 0xe97   :  { %v1304_v37 = vadd.f32 1.0, %v2423_v35 }
 0xe98   :  { %2424 = vrcp.f32 %v1411_v36 }
 0xe99   :  { %2426 = vrcp.f32 %v1304_v37 }
 0xea5   :  { %v2425_v38 = vpop.eup %2424 }
 0xea6   :  { %v2427_v41 = vpop.eup %2426  ;;  %v1418_v44 = vmul.f32 %v2425_v38, %v1416_v43 }
 0xea7   :  { %v1311_v49 = vmul.f32 %v2427_v41, %v1309_v46 }
 0xf05   :  { %v1421_v39 = vpop.permute.xlu0 %1420 }
 0xf06   :  { %v1423_v40 = vmul.f32 %v2425_v38, %v1421_v39 }
 0xf07   :  { %v1314_v42 = vpop.permute.xlu1 %1313 }
 0xf08   :  { %1425 = vrot.lane.b32.xlu0 %v1423_v40, %s2566_s1  ;;  %v1316_v62 = vmul.f32 %v2427_v41, %v1314_v42 }
 0xf0a   :  { %1318 = vrot.lane.b32.xlu1 %v1316_v62, %s2566_s1 }
 0xf7a   :  { %v1426_v47 = vpop.permute.xlu0 %1425 }
 0xf7b   :  { %v2951_v48 = vadd.f32 %v1426_v47, %v1418_v44 }
 0xf7c   :  { %v1319_v50 = vpop.permute.xlu1 %1318 }
 0xf7d   :  { %2428 = vtanh.f32 %v2951_v48  ;;  %v2954_v51 = vadd.f32 %v1319_v50, %v1311_v49  ;;  %v1630_v32 = vrot.slane %v2951_v48, 1 }
 0xf7f   :  { %2430 = vtanh.f32 %v2954_v51  ;;  %v1523_v35 = vrot.slane %v2954_v51, 7 }
 0xf8a   :  { %v2429_v52 = vpop.eup %2428 }
 0xf8b   :  { %1431 = vrot.lane.b32.xlu0 %v2429_v52, %s2565_s0 }
 0xf8c   :  { %v2431_v53 = vpop.eup %2430 }
 0xf8d   :  { %1324 = vrot.lane.b32.xlu1 %v2431_v53, %s2565_s0 }
 0xffd   :  { %v1432_v54 = vpop.permute.xlu0 %1431 }
 0xffe   :  { %v2959_v55 = vmul.f32 %v2425_v38, %v1432_v54 }
 0xfff   :  { %v1325_v57 = vpop.permute.xlu1 %1324 }
0x1000   :  { %v1543_v56 = vrot.slane %v2959_v55, 2  ;;  %v1327_v58 = vmul.f32 %v2427_v41, %v1325_v57 }
0x1002   :  { %1544 = vrot.lane.b32.xlu0 %v1543_v56, %s2566_s1  ;;  %v1436_v60 = vrot.slane %v1327_v58, 5  ;;  %v2965_v61 = vsel %vm1868_vm6, %v2918_v19, %v1327_v58 }
0x1004   :  { %1437 = vrot.lane.b32.xlu1 %v1436_v60, %s2566_s1 }
0x1074   :  { %v1545_v63 = vpop.permute.xlu0 %1544 }
0x1075   :  { %2283 = vmatmul.mubr.msk.f32.vlgmr.msra.gmra.mxu0 %vm87_vm1, %v1545_v63 }
0x1076   :  { %2297 = vmatpush3.msra.mxu0 %v2662_v14  ;;  %2304 = vmatprep.mubr.msk.f32.mxu0 %vm2564_vm0, %v2563_v0  ;;  %v1438_v1 = vpop.permute.xlu1 %1437  ;;  %v2470_v14 = vld [vmem:[#allocation5 + $0x8] sm:$0xff] }
0x1077   :  { %2298 = vmatprep.subr.mxu0 %v2563_v0  ;;  %2272 = vmatmul.mubr.msk.f32.vlgmr.msra.gmra.mxu1 %vm87_vm1, %v1438_v1 }
0x1078   :  { %2299 = vmatpush3.msra.mxu0 %v2667_v15  ;;  %2286 = vmatpush3.msra.mxu1 %v2468_v2  ;;  %v2471_v15 = vld [vmem:[#allocation5] sm:$0xff] }
0x1079   :  { %2300 = vmatprep.subr.mxu0 %v2563_v0  ;;  %2287 = vmatprep.subr.mxu1 %v2563_v0 }
0x107a   :  { %2301 = vmatpush3.msra.mxu0 %v2672_v16  ;;  %2288 = vmatpush3.msra.mxu1 %v2469_v3 }
0x107b   :  { %2302 = vmatprep.subr.mxu0 %v2563_v0  ;;  %2289 = vmatprep.subr.mxu1 %v2563_v0 }
0x107c   :  { %2303 = vmatpush3.msra.mxu0 %v2679_v17  ;;  %2290 = vmatpush3.msra.mxu1 %v2470_v14 }
0x107d   :  { %2293 = vmatprep.mubr.msk.f32.mxu1 %vm2564_vm0, %v2563_v0  ;;  %2291 = vmatprep.subr.mxu1 %v2563_v0 }
0x107e   :  { %2292 = vmatpush3.msra.mxu1 %v2471_v15 }
0x107f   :  { %2307 = vmatprep.subr.mxu1 %v2563_v0 }
0x1135   :  { %v1614_v16 = vpop.f32.mrf.mxu0 }
0x1136   :  { %v1619_v4 = vrot.slane %v1614_v16, 7 }
0x1137   :  { %v2284_v6 = vpop.f32.mrf.mxu0  ;;  %v1507_v11 = vpop.f32.mrf.mxu1 }
0x1138   :  { %v1621_v10 = vadd.f32 %v1619_v4, %v2708_v31  ;;  %v1512_v13 = vrot.slane %v1507_v11, 2 }
0x1139   :  { %v2273_v17 = vpop.f32.mrf.mxu1 }
0x113a   :  { %2432 = vtanh.f32 %v1621_v10  ;;  %v1514_v18 = vadd.f32 %v1512_v13, %v2706_v30  ;;  %v2035_v21 = vmul.f32 -1.442695, %v1621_v10 }
0x113c   :  { %2434 = vtanh.f32 %v1514_v18  ;;  %v2033_v5 = vmul.f32 -1.442695, %v1514_v18 }
0x113d   :  { %2436 = vpow2.f32 %v2035_v21 }
0x113e   :  { %2438 = vpow2.f32 %v2033_v5 }
0x1147   :  { %v2433_v19 = vpop.eup %2432 }
0x1148   :  { %1634 = vrot.lane.b32.xlu0 %v2433_v19, %s2565_s0 }
0x1149   :  { %v2435_v20 = vpop.eup %2434 }
0x114a   :  { %1527 = vrot.lane.b32.xlu1 %v2435_v20, %s2565_s0  ;;  %v2437_v7 = vpop.eup %2436 }
0x114b   :  { %v2439_v22 = vpop.eup %2438  ;;  %v1625_v24 = vadd.f32 1.0, %v2437_v7 }
0x114c   :  { %v1518_v25 = vadd.f32 1.0, %v2439_v22  ;;  %v1897_v22 = vld [vmem:[%s3078_s5 + $0x38] sm:$0xff] }
0x114d   :  { %2440 = vrcp.f32 %v1625_v24  ;;  %v1896_v24 = vld [vmem:[%s3078_s5 + $0x30] sm:$0xff] }
0x114e   :  { %2442 = vrcp.f32 %v1518_v25  ;;  %v1895_v25 = vld [vmem:[%s3078_s5 + $0x28] sm:$0xff] }
0x115a   :  { %v2441_v26 = vpop.eup %2440 }
0x115b   :  { %v2443_v28 = vpop.eup %2442  ;;  %v1632_v33 = vmul.f32 %v2441_v26, %v1630_v32  ;;  %v1890_v32 = vld [vmem:[%s3078_s5] sm:$0xff] }
0x115c   :  { %v1525_v38 = vmul.f32 %v2443_v28, %v1523_v35 }
0x11ba   :  { %v1635_v9 = vpop.permute.xlu0 %1634 }
0x11bb   :  { %v1637_v27 = vmul.f32 %v2441_v26, %v1635_v9  ;;  %v1894_v9 = vld [vmem:[%s3078_s5 + $0x20] sm:$0xff] }
0x11bc   :  { %v1528_v29 = vpop.permute.xlu1 %1527 }
0x11bd   :  { %1639 = vrot.lane.b32.xlu0 %v1637_v27, %s2566_s1  ;;  %v1530_v12 = vmul.f32 %v2443_v28, %v1528_v29  ;;  %v1893_v27 = vld [vmem:[%s3078_s5 + $0x18] sm:$0xff]  ;;  %v1892_v29 = vld [vmem:[%s3078_s5 + $0x10] sm:$0xff] }
0x11bf   :  { %1532 = vrot.lane.b32.xlu1 %v1530_v12, %s2566_s1  ;;  %v1891_v12 = vld [vmem:[%s3078_s5 + $0x8] sm:$0xff] }
0x122f   :  { %v1640_v36 = vpop.permute.xlu0 %1639 }
0x1230   :  { %v1642_v37 = vadd.f32 %v1640_v36, %v1632_v33 }
0x1231   :  { %v1533_v39 = vpop.permute.xlu1 %1532 }
0x1232   :  { %2444 = vtanh.f32 %v1642_v37  ;;  %v1535_v40 = vadd.f32 %v1533_v39, %v1525_v38  ;;  %v1841_v13 = vrot.slane %v1642_v37, 1 }
0x1234   :  { %2446 = vtanh.f32 %v1535_v40  ;;  %v1737_v20 = vrot.slane %v1535_v40, 7 }
0x123f   :  { %v2445_v41 = vpop.eup %2444 }
0x1240   :  { %1645 = vrot.lane.b32.xlu0 %v2445_v41, %s2565_s0 }
0x1241   :  { %v2447_v42 = vpop.eup %2446 }
0x1242   :  { %1538 = vrot.lane.b32.xlu1 %v2447_v42, %s2565_s0 }
0x12b2   :  { %v1646_v62 = vpop.permute.xlu0 %1645 }
0x12b3   :  { %v2995_v43 = vmul.f32 %v2441_v26, %v1646_v62 }
0x12b4   :  { %v1539_v46 = vpop.permute.xlu1 %1538 }
0x12b5   :  { %v1757_v44 = vrot.slane %v2995_v43, 1  ;;  %v1541_v47 = vmul.f32 %v2443_v28, %v1539_v46 }
0x12b7   :  { %1758 = vrot.lane.b32.xlu0 %v1757_v44, %s2566_s1  ;;  %v1650_v48 = vrot.slane %v1541_v47, 6  ;;  %v3001_v49 = vsel %vm1870_vm7, %v2965_v61, %v1541_v47 }
0x12b9   :  { %1651 = vrot.lane.b32.xlu1 %v1650_v48, %s2566_s1 }
0x1329   :  { %v1759_v50 = vpop.permute.xlu0 %1758 }
0x132a   :  { %2305 = vmatmul.mubr.msk.f32.vlgmr.msra.gmra.mxu0 %vm87_vm1, %v1759_v50 }
0x132b   :  { %v1652_v51 = vpop.permute.xlu1 %1651 }
0x132c   :  { %2294 = vmatmul.mubr.msk.f32.vlgmr.msra.gmra.mxu1 %vm87_vm1, %v1652_v51 }
0x132d   :  { %2323 = vmatprep.mubr.msk.f32.mxu1 %vm2564_vm0, %v2563_v0  ;;  %2308 = vmatpush3.msra.mxu1 %v1897_v22 }
0x132e   :  { %2309 = vmatprep.subr.mxu1 %v2563_v0 }
0x132f   :  { %2310 = vmatpush3.msra.mxu1 %v1896_v24 }
0x1330   :  { %2311 = vmatprep.subr.mxu1 %v2563_v0 }
0x1331   :  { %2312 = vmatpush3.msra.mxu1 %v1895_v25 }
0x1332   :  { %2313 = vmatprep.subr.mxu1 %v2563_v0 }
0x1333   :  { %2314 = vmatpush3.msra.mxu1 %v1894_v9 }
0x1334   :  { %2315 = vmatprep.subr.mxu1 %v2563_v0 }
0x1335   :  { %2316 = vmatpush3.msra.mxu1 %v1893_v27 }
0x1336   :  { %2317 = vmatprep.subr.mxu1 %v2563_v0 }
0x1337   :  { %2318 = vmatpush3.msra.mxu1 %v1892_v29 }
0x1338   :  { %2319 = vmatprep.subr.mxu1 %v2563_v0 }
0x1339   :  { %2320 = vmatpush3.msra.mxu1 %v1891_v12 }
0x133a   :  { %2321 = vmatprep.subr.mxu1 %v2563_v0 }
0x133b   :  { %2322 = vmatpush3.msra.mxu1 %v1890_v32 }
0x13ea   :  { %v1828_v52 = vpop.f32.mrf.mxu0 }
0x13eb   :  { %v1832_v53 = vadd.f32 %v1828_v52, %v2708_v31 }
0x13ec   :  { %v2306_v54 = vpop.f32.mrf.mxu0  ;;  %v1721_v56 = vpop.f32.mrf.mxu1 }
0x13ed   :  { %2448 = vtanh.f32 %v1832_v53  ;;  %v1726_v57 = vrot.slane %v1721_v56, 1  ;;  %v2039_v1 = vmul.f32 -1.442695, %v1832_v53 }
0x13ee   :  { %v2295_v58 = vpop.f32.mrf.mxu1 }
0x13ef   :  { %v1728_v60 = vadd.f32 %v1726_v57, %v2706_v30 }
0x13f1   :  { %2450 = vtanh.f32 %v1728_v60  ;;  %v2037_v2 = vmul.f32 -1.442695, %v1728_v60 }
0x13f2   :  { %2452 = vpow2.f32 %v2039_v1 }
0x13f3   :  { %2454 = vpow2.f32 %v2037_v2 }
0x13fa   :  { %v2449_v61 = vpop.eup %2448 }
0x13fb   :  { %1845 = vrot.lane.b32.xlu0 %v2449_v61, %s2565_s0 }
0x13fe   :  { %v2451_v63 = vpop.eup %2450 }
0x13ff   :  { %1741 = vrot.lane.b32.xlu1 %v2451_v63, %s2565_s0  ;;  %v2453_v3 = vpop.eup %2452 }
0x1400   :  { %v1836_v31 = vadd.f32 1.0, %v2453_v3  ;;  %v2455_v14 = vpop.eup %2454 }
0x1401   :  { %v1732_v15 = vadd.f32 1.0, %v2455_v14 }
0x1402   :  { %2456 = vrcp.f32 %v1836_v31 }
0x1403   :  { %2458 = vrcp.f32 %v1732_v15 }
0x140f   :  { %v2457_v16 = vpop.eup %2456 }
0x1410   :  { %v2459_v6 = vpop.eup %2458  ;;  %v1843_v17 = vmul.f32 %v2457_v16, %v1841_v13 }
0x1411   :  { %v1739_v21 = vmul.f32 %v2459_v6, %v1737_v20 }
0x146d   :  { %v1846_v4 = vpop.permute.xlu0 %1845 }
0x146e   :  { %v1848_v30 = vmul.f32 %v2457_v16, %v1846_v4 }
0x1470   :  { %1850 = vrot.lane.b32.xlu0 %v1848_v30, %s2566_s1 }
0x1471   :  { %v1742_v10 = vpop.permute.xlu1 %1741 }
0x1472   :  { %v1744_v11 = vmul.f32 %v2459_v6, %v1742_v10 }
0x1474   :  { %1746 = vrot.lane.b32.xlu1 %v1744_v11, %s2566_s1 }
0x14e2   :  { %v1851_v18 = vpop.permute.xlu0 %1850 }
0x14e3   :  { %v1853_v19 = vadd.f32 %v1851_v18, %v1843_v17 }
0x14e5   :  { %2460 = vtanh.f32 %v1853_v19 }
0x14e6   :  { %v1747_v5 = vpop.permute.xlu1 %1746 }
0x14e7   :  { %v1749_v7 = vadd.f32 %v1747_v5, %v1739_v21 }
0x14e9   :  { %2462 = vtanh.f32 %v1749_v7 }
0x14f2   :  { %v2461_v26 = vpop.eup %2460 }
0x14f3   :  { %1856 = vrot.lane.b32.xlu0 %v2461_v26, %s2565_s0 }
0x14f6   :  { %v2463_v28 = vpop.eup %2462 }
0x14f7   :  { %1752 = vrot.lane.b32.xlu1 %v2463_v28, %s2565_s0 }
0x1565   :  { %v1857_v33 = vpop.permute.xlu0 %1856 }
0x1566   :  { %v1859_v35 = vmul.f32 %v2457_v16, %v1857_v33 }
0x1568   :  { %v1874_v36 = vsel %vm1860_vm2, %v1859_v35, %v2995_v43 }
0x1569   :  { %v1875_v37 = vsel %vm1862_vm3, %v1874_v36, %v2959_v55  ;;  %v1753_v39 = vpop.permute.xlu1 %1752 }
0x156a   :  { %v1876_v38 = vsel %vm1864_vm4, %v1875_v37, %v2912_v8  ;;  %v1755_v40 = vmul.f32 %v2459_v6, %v1753_v39 }
0x156b   :  { %v1877_v0 = vsel %vm1866_vm5, %v1876_v38, %v2865_v23 }
0x156c   :  { %v1878_v41 = vsel %vm1868_vm6, %v1877_v0, %v2816_v34  ;;  %v1873_v42 = vsel %vm1872_vm8, %v3001_v49, %v1755_v40  ;;  %v2040_v34 = vld [vmem:[%s3079_s6] ss:$0 sm:$0xff]  ;;  %s1999_s6 = sshll.u32 %s2567_s24, 4  ;;  %s2000_s6 = int_to_ptr.vmem [resolvable:$true] %s1999_s6 }
0x156d   :  { %v1879_v62 = vsel %vm1870_vm7, %v1878_v41, %v2770_v45  ;;  %1882 = vrot.lane.b32.xlu0 %v1873_v42, %s2566_s1  ;;  %s2532_s25 = scalar_lea.vmem %s2000_s6, 128  ;;  %p2537_p2 = scmp.lt.s32.totalorder %s2000_s6, %s2000_s6 }
0x156e   :  { %v1880_v55 = vsel %vm1872_vm8, %v1879_v62, %v2724_v59  ;;  %p2533_p1 = scmp.ne.s32.totalorder %s2000_s6, %s2532_s25  ;;  %p2538_p3 = scmp.lt.s32.totalorder %s2532_s25, %s2532_s25 }
0x156f   :  { %1886 = vrot.lane.b32.xlu1 %v1880_v55, %s2565_s0 }
0x1570   :  { %p2539_p4 = por %p2538_p3, %p2537_p2 }
0x1572   :  { %p2540_p5 = pnand %p2539_p4, %p2533_p1 }
0x15df   :  { %v1883_v8 = vpop.permute.xlu0 %1882 }
0x15e1   :  { %v1887_v43 = vpop.permute.xlu1 %1886 }
0x15e2   :  { %v1889_v44 = vsel %vm87_vm1, %v1883_v8, %v1887_v43 }
0x15e3   :  { %2324 = vmatmul.mubr.msk.f32.vlgmr.msra.gmra.mxu1 %vm1905_vm9, %v1889_v44 }
0x16a3   :  { %v1975_v23 = vpop.f32.mrf.mxu1 }
0x16a4   :  { %v1976_v46 = vadd.f32 %v2040_v34, %v1975_v23 }
0x16a5   :  { %v2325_v45 = vpop.f32.mrf.mxu1 }
0x16a6   :  { %v1980_v47 = vsel %vm1979_vm10, %v1976_v46, -inf }
0x16a7   :  { %1981 = vmax.xlane.f32.xlu0 %v1980_v47 }
0x1730   :  { %v1982_v59 = vpop.xlane.xlu0 %1981 }
0x1731   :  { %v1983_v48 = vsub.f32 %v1976_v46, %v1982_v59 }
0x1733   :  { %v1984_v49 = vmul.f32 1.442695, %v1983_v48 }
0x1735   :  { %2464 = vpow2.f32 %v1984_v49 }
0x1742   :  { %v2465_v50 = vpop.eup %2464 }
0x1743   :  { %v1986_v51 = vsel %vm1979_vm10, %v2465_v50, 0.0 }
0x1744   :  { %1987 = vadd.xlane.f32.xlu1 %v1986_v51 }
0x17cd   :  { %v1988_v52 = vpop.xlane.xlu1 %1987 }
0x17ce   :  { %2466 = vlog2.f32 %v1988_v52 }
0x17db   :  { %v2467_v53 = vpop.eup %2466 }
0x17dc   :  { %v1990_v54 = vmul.f32 0.6931472, %v2467_v53 }
0x17de   :  { %v1991_v56 = vsub.f32 %v1983_v48, %v1990_v54 }
0x17e0   :  { %1992 = vst.msk [vmem:[#allocation8] sm:$0xff] %vm1979_vm10, %v1991_v56 }
0x17e1   :  { %2543 = shalt.err (!%p2540_p5)
}
0x17e2   :  { %2002 = dma.vmem_to_hbm [thread:$0]  %s2000_s6, 128, %s3080_s7, [#allocation4]  }
0x17e3   :  { %2556 = dma.done.wait [#allocation4], 128  }
0x17e4   :  { %2557 = vsyncadd [#allocation4], 4294967168 }
0x17e5   :  { %2006 = vsyncpa [#allocation3], 1 }
0x17e6   :  { %2007 = vsyncpa [#allocation6], 1 }
0x17e7   :  { %2008 = vsyncpa [#allocation4], 1 }

</bundles_post_ra>
